<compile_context>
chip_gen: v5e
topology: v5e:2x2
jax: 0.10.0
libtpu: 0.0.40
codegen_flags: <defaults>
</compile_context>

<pallas_src>
import functools

import jax
import jax.numpy as jnp
import numpy as np
from jax.experimental import pallas as pl
from jax.experimental.pallas import tpu as pltpu

LEAKY_SLOPE = 0.2
NEG_BIG = -1e30  # finite stand-in for -inf so isolated rows never produce NaN


def _gatv2_kernel(attn_c_ref, sl_ref, sr_ref, glT_ref, gri_ref, grj_ref, adj_ref,
                  o_ref, m_sc, l_sc, acc_sc, *, n_heads, n_hidden):
    """Grid = (i_tile, j_tile). All heads per step; online softmax over the j axis."""
    j_idx = pl.program_id(1)
    n_j = pl.num_programs(1)

    @pl.when(j_idx == 0)
    def _init():
        m_sc[...] = jnp.full(m_sc.shape, NEG_BIG, dtype=jnp.float32)
        l_sc[...] = jnp.zeros(l_sc.shape, dtype=jnp.float32)
        acc_sc[...] = jnp.zeros(acc_sc.shape, dtype=jnp.float32)

    valid = adj_ref[...] != 0          # [ti, tj] bool (int8 adjacency tile)
    sl = sl_ref[...]                   # [H, tj]  slope * (a . g_l[j])  (pre-scaled, wrapper)
    sr = sr_ref[...]                   # [ti, H]  slope * (a . g_r[i])  (pre-scaled, wrapper)
    g_lT = glT_ref[...]                # [H*Fh, tj] f32 (neighbor features, transposed)
    g_ri = gri_ref[...]                # [ti, H*Fh] f32 (target-node features)
    g_rj = grj_ref[...]                # [tj, H*Fh] f32 (neighbor features, for aggregation)

    # c_f = (1 - slope) * a_f, shared across heads; read once from SMEM.
    c = [attn_c_ref[f] for f in range(n_hidden)]

    for h in range(n_heads):
        base = h * n_hidden

        # --- scores: linear part precomputed; relu part accumulated per feature as
        #     lane-dense [ti, tj] slabs (no [ti, tj, Fh] intermediate). ---
        e = sl[h:h + 1, :] + sr[:, h:h + 1]                          # [ti, tj]
        for f in range(n_hidden):
            s = g_lT[base + f:base + f + 1, :] + g_ri[:, base + f:base + f + 1]
            e = e + c[f] * jnp.maximum(s, 0.0)
        e = jnp.where(valid, e, NEG_BIG)                             # masked_fill(adj == 0, -inf)

        # --- online softmax over the j (neighbor) axis ---
        m_prev = m_sc[h]                                                 # [ti, 1]
        m_new = jnp.maximum(m_prev, jnp.max(e, axis=1, keepdims=True))   # [ti, 1]
        alpha = jnp.exp(m_prev - m_new)                                  # [ti, 1]
        p = jnp.exp(e - m_new)                                           # [ti, tj]
        l_sc[h] = alpha * l_sc[h] + jnp.sum(p, axis=1, keepdims=True)
        m_sc[h] = m_new

        # --- aggregation: acc_h = alpha * acc_h + p @ g_r[j_block, head h]  (MXU) ---
        pv = jnp.dot(p, g_rj[:, base:base + n_hidden],
                     preferred_element_type=jnp.float32)                 # [ti, Fh]
        acc_sc[:, base:base + n_hidden] = alpha * acc_sc[:, base:base + n_hidden] + pv

    @pl.when(j_idx == n_j - 1)
    def _finalize():
        for h in range(n_heads):
            base = h * n_hidden
            inv_l = pl.reciprocal(l_sc[h], approx=True)                  # [ti, 1] (EUP rcp)
            hp = acc_sc[:, base:base + n_hidden] * inv_l
            # ELU; clamp exp argument so the discarded branch never produces inf.
            o_ref[:, base:base + n_hidden] = jnp.where(
                hp > 0.0, hp, jnp.exp(jnp.minimum(hp, 0.0)) - 1.0)


def gatv2_forward(h, adj, w_l, w_r, attn_w, *, n_heads,
                  negative_slope=LEAKY_SLOPE, tile_i=128, tile_j=256):
    """
    h      : [n_nodes, in_features] float32
    adj    : [n_nodes, n_nodes]     (any dtype; nonzero == edge; shared across heads)
    w_l    : [n_heads*n_hidden, in_features]  (torch Linear weight layout)
    w_r    : [n_heads*n_hidden, in_features]  (== w_l when share_weights=True)
    attn_w : [1, n_hidden]                    (torch Linear(n_hidden, 1) weight)
    returns: [n_nodes, n_heads*n_hidden]      (is_concat=True, ELU applied; eval-mode dropout)
    """
    n_nodes, _ = h.shape
    hf_total = w_l.shape[0]
    n_hidden = hf_total // n_heads

    # Fused all-heads projections: one MXU-friendly matmul each, outside the kernel.
    g_r = jnp.dot(h, w_r.T, preferred_element_type=jnp.float32)    # [N, H*Fh]
    g_lT = jnp.dot(w_l, h.T, preferred_element_type=jnp.float32)   # [H*Fh, N] (nodes on lanes)

    a = attn_w.reshape(-1).astype(jnp.float32)                     # [Fh]
    # LeakyReLU decomposition: leaky(x) = slope*x + (1-slope)*relu(x).
    # Linear part collapses to per-node dot products (pre-scaled by slope here):
    sl = (negative_slope *
          jnp.einsum('hfn,f->hn', g_lT.reshape(n_heads, n_hidden, n_nodes), a))  # [H, N]
    sr = (negative_slope *
          jnp.einsum('nhf,f->nh', g_r.reshape(n_nodes, n_heads, n_hidden), a))   # [N, H]
    c = ((1.0 - negative_slope) * a).astype(jnp.float32)            # [Fh], read from SMEM

    adj_i8 = (adj != 0).astype(jnp.int8)                            # O(N^2) input as int8

    # Node tiling; clamp to the full graph when small. Non-divisible N falls back to
    # full-graph tiles (pad N to a tile multiple for large irregular graphs).
    ti = n_nodes if (n_nodes <= tile_i or n_nodes % tile_i) else tile_i
    tj = n_nodes if (n_nodes <= tile_j or n_nodes % tile_j) else tile_j
    grid = (n_nodes // ti, n_nodes // tj)

    # VMEM budget: double-buffered inputs + resident output + scratch + score-slab headroom.
    est = (2 * (hf_total * tj + ti * hf_total + tj * hf_total
                + n_heads * tj + ti * n_heads) * 4
           + 2 * ti * tj                         # int8 adjacency, double-buffered
           + 2 * ti * hf_total * 4               # output block
           + (2 * n_heads * ti + ti * hf_total) * 4   # m/l/acc scratch
           + 6 * ti * tj * 4)                    # e/p working slabs
    vmem_limit = int(min(48 * 2**20, max(16 * 2**20, 2 * est)))

    kernel = functools.partial(_gatv2_kernel, n_heads=n_heads, n_hidden=n_hidden)

    return pl.pallas_call(
        kernel,
        out_shape=jax.ShapeDtypeStruct((n_nodes, hf_total), jnp.float32),
        grid_spec=pltpu.PrefetchScalarGridSpec(
            num_scalar_prefetch=0,
            grid=grid,
            in_specs=[
                pl.BlockSpec(memory_space=pltpu.MemorySpace.SMEM),        # c = (1-slope)*a
                pl.BlockSpec((n_heads, tj), lambda i, j: (0, j)),         # sl (j block)
                pl.BlockSpec((ti, n_heads), lambda i, j: (i, 0)),         # sr (i block)
                pl.BlockSpec((hf_total, tj), lambda i, j: (0, j)),        # g_l^T   (j block)
                pl.BlockSpec((ti, hf_total), lambda i, j: (i, 0)),        # g_r     (i block)
                pl.BlockSpec((tj, hf_total), lambda i, j: (j, 0)),        # g_r     (j block)
                pl.BlockSpec((ti, tj), lambda i, j: (i, j)),              # adjacency (int8)
            ],
            out_specs=pl.BlockSpec((ti, hf_total), lambda i, j: (i, 0)),  # lane-dense [N, H*Fh]
            scratch_shapes=[
                pltpu.VMEM((n_heads, ti, 1), jnp.float32),   # running max   m
                pltpu.VMEM((n_heads, ti, 1), jnp.float32),   # running denom l
                pltpu.VMEM((ti, hf_total), jnp.float32),     # running weighted sum
            ],
        ),
        compiler_params=pltpu.CompilerParams(
            dimension_semantics=("parallel", "arbitrary"),
            vmem_limit_bytes=vmem_limit,
        ),
    )(c, sl, sr, g_lT, g_r, g_r, adj_i8)


def gatv2_reference(h, adj, w_l, w_r, attn_w, *, n_heads):
    """Pure-JAX reference mirroring the PyTorch forward (eval mode, is_concat=True)."""
    n_nodes = h.shape[0]
    n_hidden = w_l.shape[0] // n_heads
    g_l = (h @ w_l.T).reshape(n_nodes, n_heads, n_hidden)
    g_r = (h @ w_r.T).reshape(n_nodes, n_heads, n_hidden)
    s = g_l[None, :, :, :] + g_r[:, None, :, :]               # [i, j, h, f]
    act = jnp.where(s >= 0, s, LEAKY_SLOPE * s)
    e = jnp.einsum("ijhf,f->ijh", act, attn_w[0])
    e = jnp.where(adj[:, :, None] > 0, e, -jnp.inf)
    a = jax.nn.softmax(e, axis=1)
    hp = jnp.einsum("ijh,jhf->ihf", a, g_r).reshape(n_nodes, n_heads * n_hidden)
    return jnp.where(hp > 0, hp, jnp.exp(hp) - 1.0)


if __name__ == "__main__":
    # Small shapes: n_nodes=16, in_features=8, out_features=32, n_heads=4 -> n_hidden=8
    N, F_IN, F_OUT, H = 16, 8, 32, 4
    FH = F_OUT // H

    key = jax.random.PRNGKey(0)
    k1, k2, k3, k4, k5 = jax.random.split(key, 5)

    h = jax.random.normal(k1, (N, F_IN), dtype=jnp.float32)
    w_l = 0.3 * jax.random.normal(k2, (H * FH, F_IN), dtype=jnp.float32)
    w_r = 0.3 * jax.random.normal(k3, (H * FH, F_IN), dtype=jnp.float32)
    attn_w = 0.3 * jax.random.normal(k4, (1, FH), dtype=jnp.float32)

    # Random 0/1 adjacency with self-loops (every row has at least one edge).
    adj = (jax.random.uniform(k5, (N, N)) < 0.4).astype(jnp.float32)
    adj = jnp.maximum(adj, jnp.eye(N, dtype=jnp.float32))

    out = gatv2_forward(h, adj, w_l, w_r, attn_w, n_heads=H)
    out = jax.block_until_ready(out)

    ref = gatv2_reference(h, adj, w_l, w_r, attn_w, n_heads=H)
    # Tolerance accommodates the approximate EUP reciprocal in the softmax normalization.
    np.testing.assert_allclose(np.asarray(out), np.asarray(ref), rtol=1e-2, atol=1e-2)

    print("KERNEL_OK")
</pallas_src>

<mosaic_0001>
module attributes {stable_mosaic.version = 11 : i64} {
  func.func @_gatv2_kernel(%arg0: i32, %arg1: i32, %arg2: memref<8xf32, #tpu.memory_space<smem>>, %arg3: memref<4x16xf32, #tpu.memory_space<vmem>>, %arg4: memref<16x4xf32, #tpu.memory_space<vmem>>, %arg5: memref<32x16xf32, #tpu.memory_space<vmem>>, %arg6: memref<16x32xf32, #tpu.memory_space<vmem>>, %arg7: memref<16x32xf32, #tpu.memory_space<vmem>>, %arg8: memref<16x16xi8, #tpu.memory_space<vmem>>, %arg9: memref<16x32xf32, #tpu.memory_space<vmem>>, %arg10: memref<4x16x1xf32, #tpu.memory_space<vmem>>, %arg11: memref<4x16x1xf32, #tpu.memory_space<vmem>>, %arg12: memref<16x32xf32, #tpu.memory_space<vmem>>) attributes {dimension_semantics = [#tpu.dimension_semantics<parallel>, #tpu.dimension_semantics<arbitrary>], iteration_bounds = array<i64: 1, 1>, scalar_prefetch = 0 : i64, scratch_operands = 3 : i64, tpu.core_type = #tpu.core_type<tc>, window_params = [{transform_indices = @transform_0, window_bounds = array<i64: 8>}, {transform_indices = @transform_1, window_bounds = array<i64: 4, 16>}, {transform_indices = @transform_2, window_bounds = array<i64: 16, 4>}, {transform_indices = @transform_3, window_bounds = array<i64: 32, 16>}, {transform_indices = @transform_4, window_bounds = array<i64: 16, 32>}, {transform_indices = @transform_5, window_bounds = array<i64: 16, 32>}, {transform_indices = @transform_6, window_bounds = array<i64: 16, 16>}, {transform_indices = @transform_7, window_bounds = array<i64: 16, 32>}]} {
    %c0_i32 = arith.constant 0 : i32
    %0 = arith.cmpi eq, %arg1, %c0_i32 : i32
    %1 = arith.extui %0 : i1 to i32
    %c0_i32_0 = arith.constant 0 : i32
    %2 = arith.cmpi ne, %1, %c0_i32_0 : i32
    scf.if %2 {
      %cst_123 = arith.constant -1.000000e+30 : f32
      %486 = vector.broadcast %cst_123 : f32 to vector<4x16x1xf32>
      %c0_124 = arith.constant 0 : index
      %c0_125 = arith.constant 0 : index
      %c0_126 = arith.constant 0 : index
      %487 = vector.load %arg10[%c0_124, %c0_125, %c0_126] : memref<4x16x1xf32, #tpu.memory_space<vmem>>, vector<4x16x1xf32>
      tpu.vector_store %arg10[%c0_124, %c0_125, %c0_126], %486 {strides = array<i32>} : memref<4x16x1xf32, #tpu.memory_space<vmem>>, vector<4x16x1xf32>,
      %cst_127 = arith.constant 0.000000e+00 : f32
      %488 = vector.broadcast %cst_127 : f32 to vector<4x16x1xf32>
      %c0_128 = arith.constant 0 : index
      %c0_129 = arith.constant 0 : index
      %c0_130 = arith.constant 0 : index
      %489 = vector.load %arg11[%c0_128, %c0_129, %c0_130] : memref<4x16x1xf32, #tpu.memory_space<vmem>>, vector<4x16x1xf32>
      tpu.vector_store %arg11[%c0_128, %c0_129, %c0_130], %488 {strides = array<i32>} : memref<4x16x1xf32, #tpu.memory_space<vmem>>, vector<4x16x1xf32>,
      %cst_131 = arith.constant 0.000000e+00 : f32
      %490 = vector.broadcast %cst_131 : f32 to vector<16x32xf32>
      %c0_132 = arith.constant 0 : index
      %c0_133 = arith.constant 0 : index
      %491 = vector.load %arg12[%c0_132, %c0_133] : memref<16x32xf32, #tpu.memory_space<vmem>>, vector<16x32xf32>
      tpu.vector_store %arg12[%c0_132, %c0_133], %490 {strides = array<i32>} : memref<16x32xf32, #tpu.memory_space<vmem>>, vector<16x32xf32>,
    } else {
    }
    %c0 = arith.constant 0 : index
    %c0_1 = arith.constant 0 : index
    %3 = vector.load %arg8[%c0, %c0_1] : memref<16x16xi8, #tpu.memory_space<vmem>>, vector<16x16xi8>
    %c0_i8 = arith.constant 0 : i8
    %4 = vector.broadcast %c0_i8 : i8 to vector<16x16xi8>
    %5 = arith.cmpi ne, %3, %4 : vector<16x16xi8>
    %c0_2 = arith.constant 0 : index
    %c0_3 = arith.constant 0 : index
    %6 = vector.load %arg3[%c0_2, %c0_3] : memref<4x16xf32, #tpu.memory_space<vmem>>, vector<4x16xf32>
    %c0_4 = arith.constant 0 : index
    %c0_5 = arith.constant 0 : index
    %7 = vector.load %arg4[%c0_4, %c0_5] : memref<16x4xf32, #tpu.memory_space<vmem>>, vector<16x4xf32>
    %c0_6 = arith.constant 0 : index
    %c0_7 = arith.constant 0 : index
    %8 = vector.load %arg5[%c0_6, %c0_7] : memref<32x16xf32, #tpu.memory_space<vmem>>, vector<32x16xf32>
    %c0_8 = arith.constant 0 : index
    %c0_9 = arith.constant 0 : index
    %9 = vector.load %arg6[%c0_8, %c0_9] : memref<16x32xf32, #tpu.memory_space<vmem>>, vector<16x32xf32>
    %c0_10 = arith.constant 0 : index
    %c0_11 = arith.constant 0 : index
    %10 = vector.load %arg7[%c0_10, %c0_11] : memref<16x32xf32, #tpu.memory_space<vmem>>, vector<16x32xf32>
    %c0_12 = arith.constant 0 : index
    %11 = memref.load %arg2[%c0_12] : memref<8xf32, #tpu.memory_space<smem>>
    %c1 = arith.constant 1 : index
    %12 = memref.load %arg2[%c1] : memref<8xf32, #tpu.memory_space<smem>>
    %c2 = arith.constant 2 : index
    %13 = memref.load %arg2[%c2] : memref<8xf32, #tpu.memory_space<smem>>
    %c3 = arith.constant 3 : index
    %14 = memref.load %arg2[%c3] : memref<8xf32, #tpu.memory_space<smem>>
    %c4 = arith.constant 4 : index
    %15 = memref.load %arg2[%c4] : memref<8xf32, #tpu.memory_space<smem>>
    %c5 = arith.constant 5 : index
    %16 = memref.load %arg2[%c5] : memref<8xf32, #tpu.memory_space<smem>>
    %c6 = arith.constant 6 : index
    %17 = memref.load %arg2[%c6] : memref<8xf32, #tpu.memory_space<smem>>
    %c7 = arith.constant 7 : index
    %18 = memref.load %arg2[%c7] : memref<8xf32, #tpu.memory_space<smem>>
    %19 = vector.extract_strided_slice %6 {offsets = [0, 0], sizes = [1, 16], strides = [1, 1]} : vector<4x16xf32> to vector<1x16xf32>
    %20 = vector.extract_strided_slice %7 {offsets = [0, 0], sizes = [16, 1], strides = [1, 1]} : vector<16x4xf32> to vector<16x1xf32>
    %21 = vector.broadcast %19 : vector<1x16xf32> to vector<16x16xf32>
    %22 = vector.broadcast %20 : vector<16x1xf32> to vector<16x16xf32>
    %23 = arith.addf %21, %22 : vector<16x16xf32>
    %24 = vector.extract_strided_slice %8 {offsets = [0, 0], sizes = [1, 16], strides = [1, 1]} : vector<32x16xf32> to vector<1x16xf32>
    %25 = vector.extract_strided_slice %9 {offsets = [0, 0], sizes = [16, 1], strides = [1, 1]} : vector<16x32xf32> to vector<16x1xf32>
    %26 = vector.broadcast %24 : vector<1x16xf32> to vector<16x16xf32>
    %27 = vector.broadcast %25 : vector<16x1xf32> to vector<16x16xf32>
    %28 = arith.addf %26, %27 : vector<16x16xf32>
    %cst = arith.constant 0.000000e+00 : f32
    %29 = vector.broadcast %cst : f32 to vector<16x16xf32>
    %30 = arith.maximumf %28, %29 : vector<16x16xf32>
    %31 = vector.broadcast %11 : f32 to vector<16x16xf32>
    %32 = arith.mulf %31, %30 : vector<16x16xf32>
    %33 = arith.addf %23, %32 : vector<16x16xf32>
    %34 = vector.extract_strided_slice %8 {offsets = [1, 0], sizes = [1, 16], strides = [1, 1]} : vector<32x16xf32> to vector<1x16xf32>
    %35 = vector.extract_strided_slice %9 {offsets = [0, 1], sizes = [16, 1], strides = [1, 1]} : vector<16x32xf32> to vector<16x1xf32>
    %36 = vector.broadcast %34 : vector<1x16xf32> to vector<16x16xf32>
    %37 = vector.broadcast %35 : vector<16x1xf32> to vector<16x16xf32>
    %38 = arith.addf %36, %37 : vector<16x16xf32>
    %cst_13 = arith.constant 0.000000e+00 : f32
    %39 = vector.broadcast %cst_13 : f32 to vector<16x16xf32>
    %40 = arith.maximumf %38, %39 : vector<16x16xf32>
    %41 = vector.broadcast %12 : f32 to vector<16x16xf32>
    %42 = arith.mulf %41, %40 : vector<16x16xf32>
    %43 = arith.addf %33, %42 : vector<16x16xf32>
    %44 = vector.extract_strided_slice %8 {offsets = [2, 0], sizes = [1, 16], strides = [1, 1]} : vector<32x16xf32> to vector<1x16xf32>
    %45 = vector.extract_strided_slice %9 {offsets = [0, 2], sizes = [16, 1], strides = [1, 1]} : vector<16x32xf32> to vector<16x1xf32>
    %46 = vector.broadcast %44 : vector<1x16xf32> to vector<16x16xf32>
    %47 = vector.broadcast %45 : vector<16x1xf32> to vector<16x16xf32>
    %48 = arith.addf %46, %47 : vector<16x16xf32>
    %cst_14 = arith.constant 0.000000e+00 : f32
    %49 = vector.broadcast %cst_14 : f32 to vector<16x16xf32>
    %50 = arith.maximumf %48, %49 : vector<16x16xf32>
    %51 = vector.broadcast %13 : f32 to vector<16x16xf32>
    %52 = arith.mulf %51, %50 : vector<16x16xf32>
    %53 = arith.addf %43, %52 : vector<16x16xf32>
    %54 = vector.extract_strided_slice %8 {offsets = [3, 0], sizes = [1, 16], strides = [1, 1]} : vector<32x16xf32> to vector<1x16xf32>
    %55 = vector.extract_strided_slice %9 {offsets = [0, 3], sizes = [16, 1], strides = [1, 1]} : vector<16x32xf32> to vector<16x1xf32>
    %56 = vector.broadcast %54 : vector<1x16xf32> to vector<16x16xf32>
    %57 = vector.broadcast %55 : vector<16x1xf32> to vector<16x16xf32>
    %58 = arith.addf %56, %57 : vector<16x16xf32>
    %cst_15 = arith.constant 0.000000e+00 : f32
    %59 = vector.broadcast %cst_15 : f32 to vector<16x16xf32>
    %60 = arith.maximumf %58, %59 : vector<16x16xf32>
    %61 = vector.broadcast %14 : f32 to vector<16x16xf32>
    %62 = arith.mulf %61, %60 : vector<16x16xf32>
    %63 = arith.addf %53, %62 : vector<16x16xf32>
    %64 = vector.extract_strided_slice %8 {offsets = [4, 0], sizes = [1, 16], strides = [1, 1]} : vector<32x16xf32> to vector<1x16xf32>
    %65 = vector.extract_strided_slice %9 {offsets = [0, 4], sizes = [16, 1], strides = [1, 1]} : vector<16x32xf32> to vector<16x1xf32>
    %66 = vector.broadcast %64 : vector<1x16xf32> to vector<16x16xf32>
    %67 = vector.broadcast %65 : vector<16x1xf32> to vector<16x16xf32>
    %68 = arith.addf %66, %67 : vector<16x16xf32>
    %cst_16 = arith.constant 0.000000e+00 : f32
    %69 = vector.broadcast %cst_16 : f32 to vector<16x16xf32>
    %70 = arith.maximumf %68, %69 : vector<16x16xf32>
    %71 = vector.broadcast %15 : f32 to vector<16x16xf32>
    %72 = arith.mulf %71, %70 : vector<16x16xf32>
    %73 = arith.addf %63, %72 : vector<16x16xf32>
    %74 = vector.extract_strided_slice %8 {offsets = [5, 0], sizes = [1, 16], strides = [1, 1]} : vector<32x16xf32> to vector<1x16xf32>
    %75 = vector.extract_strided_slice %9 {offsets = [0, 5], sizes = [16, 1], strides = [1, 1]} : vector<16x32xf32> to vector<16x1xf32>
    %76 = vector.broadcast %74 : vector<1x16xf32> to vector<16x16xf32>
    %77 = vector.broadcast %75 : vector<16x1xf32> to vector<16x16xf32>
    %78 = arith.addf %76, %77 : vector<16x16xf32>
    %cst_17 = arith.constant 0.000000e+00 : f32
    %79 = vector.broadcast %cst_17 : f32 to vector<16x16xf32>
    %80 = arith.maximumf %78, %79 : vector<16x16xf32>
    %81 = vector.broadcast %16 : f32 to vector<16x16xf32>
    %82 = arith.mulf %81, %80 : vector<16x16xf32>
    %83 = arith.addf %73, %82 : vector<16x16xf32>
    %84 = vector.extract_strided_slice %8 {offsets = [6, 0], sizes = [1, 16], strides = [1, 1]} : vector<32x16xf32> to vector<1x16xf32>
    %85 = vector.extract_strided_slice %9 {offsets = [0, 6], sizes = [16, 1], strides = [1, 1]} : vector<16x32xf32> to vector<16x1xf32>
    %86 = vector.broadcast %84 : vector<1x16xf32> to vector<16x16xf32>
    %87 = vector.broadcast %85 : vector<16x1xf32> to vector<16x16xf32>
    %88 = arith.addf %86, %87 : vector<16x16xf32>
    %cst_18 = arith.constant 0.000000e+00 : f32
    %89 = vector.broadcast %cst_18 : f32 to vector<16x16xf32>
    %90 = arith.maximumf %88, %89 : vector<16x16xf32>
    %91 = vector.broadcast %17 : f32 to vector<16x16xf32>
    %92 = arith.mulf %91, %90 : vector<16x16xf32>
    %93 = arith.addf %83, %92 : vector<16x16xf32>
    %94 = vector.extract_strided_slice %8 {offsets = [7, 0], sizes = [1, 16], strides = [1, 1]} : vector<32x16xf32> to vector<1x16xf32>
    %95 = vector.extract_strided_slice %9 {offsets = [0, 7], sizes = [16, 1], strides = [1, 1]} : vector<16x32xf32> to vector<16x1xf32>
    %96 = vector.broadcast %94 : vector<1x16xf32> to vector<16x16xf32>
    %97 = vector.broadcast %95 : vector<16x1xf32> to vector<16x16xf32>
    %98 = arith.addf %96, %97 : vector<16x16xf32>
    %cst_19 = arith.constant 0.000000e+00 : f32
    %99 = vector.broadcast %cst_19 : f32 to vector<16x16xf32>
    %100 = arith.maximumf %98, %99 : vector<16x16xf32>
    %101 = vector.broadcast %18 : f32 to vector<16x16xf32>
    %102 = arith.mulf %101, %100 : vector<16x16xf32>
    %103 = arith.addf %93, %102 : vector<16x16xf32>
    %cst_20 = arith.constant -1.000000e+30 : f32
    %104 = vector.broadcast %cst_20 : f32 to vector<16x16xf32>
    %105 = arith.select %5, %103, %104 : vector<16x16xi1>, vector<16x16xf32>
    %c0_21 = arith.constant 0 : index
    %c0_22 = arith.constant 0 : index
    %c0_23 = arith.constant 0 : index
    %106 = vector.load %arg10[%c0_21, %c0_22, %c0_23] : memref<4x16x1xf32, #tpu.memory_space<vmem>>, vector<1x16x1xf32>
    %107 = vector.shape_cast %106 : vector<1x16x1xf32> to vector<16x1xf32>
    %cst_24 = arith.constant dense<0xFF800000> : vector<16xf32>
    %108 = vector.multi_reduction <maximumf>, %105, %cst_24 [1] : vector<16x16xf32> to vector<16xf32>
    %109 = vector.shape_cast %108 : vector<16xf32> to vector<16x1xf32>
    %110 = arith.maximumf %107, %109 : vector<16x1xf32>
    %111 = arith.subf %107, %110 : vector<16x1xf32>
    %112 = math.exp %111 : vector<16x1xf32>
    %113 = vector.broadcast %110 : vector<16x1xf32> to vector<16x16xf32>
    %114 = arith.subf %105, %113 : vector<16x16xf32>
    %115 = math.exp %114 : vector<16x16xf32>
    %c0_25 = arith.constant 0 : index
    %c0_26 = arith.constant 0 : index
    %c0_27 = arith.constant 0 : index
    %116 = vector.load %arg11[%c0_25, %c0_26, %c0_27] : memref<4x16x1xf32, #tpu.memory_space<vmem>>, vector<1x16x1xf32>
    %117 = vector.shape_cast %116 : vector<1x16x1xf32> to vector<16x1xf32>
    %118 = arith.mulf %112, %117 : vector<16x1xf32>
    %cst_28 = arith.constant dense<0.000000e+00> : vector<16xf32>
    %119 = vector.multi_reduction <add>, %115, %cst_28 [1] : vector<16x16xf32> to vector<16xf32>
    %120 = vector.shape_cast %119 : vector<16xf32> to vector<16x1xf32>
    %121 = arith.addf %118, %120 : vector<16x1xf32>
    %c0_29 = arith.constant 0 : index
    %c0_30 = arith.constant 0 : index
    %c0_31 = arith.constant 0 : index
    %122 = vector.load %arg11[%c0_29, %c0_30, %c0_31] : memref<4x16x1xf32, #tpu.memory_space<vmem>>, vector<1x16x1xf32>
    %123 = vector.shape_cast %122 : vector<1x16x1xf32> to vector<16x1xf32>
    %124 = vector.shape_cast %121 : vector<16x1xf32> to vector<1x16x1xf32>
    tpu.vector_store %arg11[%c0_29, %c0_30, %c0_31], %124 {strides = array<i32>} : memref<4x16x1xf32, #tpu.memory_space<vmem>>, vector<1x16x1xf32>,
    %c0_32 = arith.constant 0 : index
    %c0_33 = arith.constant 0 : index
    %c0_34 = arith.constant 0 : index
    %125 = vector.load %arg10[%c0_32, %c0_33, %c0_34] : memref<4x16x1xf32, #tpu.memory_space<vmem>>, vector<1x16x1xf32>
    %126 = vector.shape_cast %125 : vector<1x16x1xf32> to vector<16x1xf32>
    %127 = vector.shape_cast %110 : vector<16x1xf32> to vector<1x16x1xf32>
    tpu.vector_store %arg10[%c0_32, %c0_33, %c0_34], %127 {strides = array<i32>} : memref<4x16x1xf32, #tpu.memory_space<vmem>>, vector<1x16x1xf32>,
    %128 = vector.extract_strided_slice %10 {offsets = [0, 0], sizes = [16, 8], strides = [1, 1]} : vector<16x32xf32> to vector<16x8xf32>
    %cst_35 = arith.constant dense<0.000000e+00> : vector<16x8xf32>
    %129 = tpu.matmul %115, %128, %cst_35 {dimension_numbers = #tpu.dot_dimension_numbers<[1], [0], [0], [1], [0, 0, 1, 1], [], []>} : vector<16x16xf32>, vector<16x8xf32>, vector<16x8xf32> -> vector<16x8xf32>
    %c0_36 = arith.constant 0 : index
    %c0_37 = arith.constant 0 : index
    %130 = vector.load %arg12[%c0_36, %c0_37] : memref<16x32xf32, #tpu.memory_space<vmem>>, vector<16x8xf32>
    %131 = vector.broadcast %112 : vector<16x1xf32> to vector<16x8xf32>
    %132 = arith.mulf %131, %130 : vector<16x8xf32>
    %133 = arith.addf %132, %129 : vector<16x8xf32>
    %c0_38 = arith.constant 0 : index
    %c0_39 = arith.constant 0 : index
    %134 = vector.load %arg12[%c0_38, %c0_39] : memref<16x32xf32, #tpu.memory_space<vmem>>, vector<16x8xf32>
    tpu.vector_store %arg12[%c0_38, %c0_39], %133 {strides = array<i32>} : memref<16x32xf32, #tpu.memory_space<vmem>>, vector<16x8xf32>,
    %135 = vector.extract_strided_slice %6 {offsets = [1, 0], sizes = [1, 16], strides = [1, 1]} : vector<4x16xf32> to vector<1x16xf32>
    %136 = vector.extract_strided_slice %7 {offsets = [0, 1], sizes = [16, 1], strides = [1, 1]} : vector<16x4xf32> to vector<16x1xf32>
    %137 = vector.broadcast %135 : vector<1x16xf32> to vector<16x16xf32>
    %138 = vector.broadcast %136 : vector<16x1xf32> to vector<16x16xf32>
    %139 = arith.addf %137, %138 : vector<16x16xf32>
    %140 = vector.extract_strided_slice %8 {offsets = [8, 0], sizes = [1, 16], strides = [1, 1]} : vector<32x16xf32> to vector<1x16xf32>
    %141 = vector.extract_strided_slice %9 {offsets = [0, 8], sizes = [16, 1], strides = [1, 1]} : vector<16x32xf32> to vector<16x1xf32>
    %142 = vector.broadcast %140 : vector<1x16xf32> to vector<16x16xf32>
    %143 = vector.broadcast %141 : vector<16x1xf32> to vector<16x16xf32>
    %144 = arith.addf %142, %143 : vector<16x16xf32>
    %cst_40 = arith.constant 0.000000e+00 : f32
    %145 = vector.broadcast %cst_40 : f32 to vector<16x16xf32>
    %146 = arith.maximumf %144, %145 : vector<16x16xf32>
    %147 = vector.broadcast %11 : f32 to vector<16x16xf32>
    %148 = arith.mulf %147, %146 : vector<16x16xf32>
    %149 = arith.addf %139, %148 : vector<16x16xf32>
    %150 = vector.extract_strided_slice %8 {offsets = [9, 0], sizes = [1, 16], strides = [1, 1]} : vector<32x16xf32> to vector<1x16xf32>
    %151 = vector.extract_strided_slice %9 {offsets = [0, 9], sizes = [16, 1], strides = [1, 1]} : vector<16x32xf32> to vector<16x1xf32>
    %152 = vector.broadcast %150 : vector<1x16xf32> to vector<16x16xf32>
    %153 = vector.broadcast %151 : vector<16x1xf32> to vector<16x16xf32>
    %154 = arith.addf %152, %153 : vector<16x16xf32>
    %cst_41 = arith.constant 0.000000e+00 : f32
    %155 = vector.broadcast %cst_41 : f32 to vector<16x16xf32>
    %156 = arith.maximumf %154, %155 : vector<16x16xf32>
    %157 = vector.broadcast %12 : f32 to vector<16x16xf32>
    %158 = arith.mulf %157, %156 : vector<16x16xf32>
    %159 = arith.addf %149, %158 : vector<16x16xf32>
    %160 = vector.extract_strided_slice %8 {offsets = [10, 0], sizes = [1, 16], strides = [1, 1]} : vector<32x16xf32> to vector<1x16xf32>
    %161 = vector.extract_strided_slice %9 {offsets = [0, 10], sizes = [16, 1], strides = [1, 1]} : vector<16x32xf32> to vector<16x1xf32>
    %162 = vector.broadcast %160 : vector<1x16xf32> to vector<16x16xf32>
    %163 = vector.broadcast %161 : vector<16x1xf32> to vector<16x16xf32>
    %164 = arith.addf %162, %163 : vector<16x16xf32>
    %cst_42 = arith.constant 0.000000e+00 : f32
    %165 = vector.broadcast %cst_42 : f32 to vector<16x16xf32>
    %166 = arith.maximumf %164, %165 : vector<16x16xf32>
    %167 = vector.broadcast %13 : f32 to vector<16x16xf32>
    %168 = arith.mulf %167, %166 : vector<16x16xf32>
    %169 = arith.addf %159, %168 : vector<16x16xf32>
    %170 = vector.extract_strided_slice %8 {offsets = [11, 0], sizes = [1, 16], strides = [1, 1]} : vector<32x16xf32> to vector<1x16xf32>
    %171 = vector.extract_strided_slice %9 {offsets = [0, 11], sizes = [16, 1], strides = [1, 1]} : vector<16x32xf32> to vector<16x1xf32>
    %172 = vector.broadcast %170 : vector<1x16xf32> to vector<16x16xf32>
    %173 = vector.broadcast %171 : vector<16x1xf32> to vector<16x16xf32>
    %174 = arith.addf %172, %173 : vector<16x16xf32>
    %cst_43 = arith.constant 0.000000e+00 : f32
    %175 = vector.broadcast %cst_43 : f32 to vector<16x16xf32>
    %176 = arith.maximumf %174, %175 : vector<16x16xf32>
    %177 = vector.broadcast %14 : f32 to vector<16x16xf32>
    %178 = arith.mulf %177, %176 : vector<16x16xf32>
    %179 = arith.addf %169, %178 : vector<16x16xf32>
    %180 = vector.extract_strided_slice %8 {offsets = [12, 0], sizes = [1, 16], strides = [1, 1]} : vector<32x16xf32> to vector<1x16xf32>
    %181 = vector.extract_strided_slice %9 {offsets = [0, 12], sizes = [16, 1], strides = [1, 1]} : vector<16x32xf32> to vector<16x1xf32>
    %182 = vector.broadcast %180 : vector<1x16xf32> to vector<16x16xf32>
    %183 = vector.broadcast %181 : vector<16x1xf32> to vector<16x16xf32>
    %184 = arith.addf %182, %183 : vector<16x16xf32>
    %cst_44 = arith.constant 0.000000e+00 : f32
    %185 = vector.broadcast %cst_44 : f32 to vector<16x16xf32>
    %186 = arith.maximumf %184, %185 : vector<16x16xf32>
    %187 = vector.broadcast %15 : f32 to vector<16x16xf32>
    %188 = arith.mulf %187, %186 : vector<16x16xf32>
    %189 = arith.addf %179, %188 : vector<16x16xf32>
    %190 = vector.extract_strided_slice %8 {offsets = [13, 0], sizes = [1, 16], strides = [1, 1]} : vector<32x16xf32> to vector<1x16xf32>
    %191 = vector.extract_strided_slice %9 {offsets = [0, 13], sizes = [16, 1], strides = [1, 1]} : vector<16x32xf32> to vector<16x1xf32>
    %192 = vector.broadcast %190 : vector<1x16xf32> to vector<16x16xf32>
    %193 = vector.broadcast %191 : vector<16x1xf32> to vector<16x16xf32>
    %194 = arith.addf %192, %193 : vector<16x16xf32>
    %cst_45 = arith.constant 0.000000e+00 : f32
    %195 = vector.broadcast %cst_45 : f32 to vector<16x16xf32>
    %196 = arith.maximumf %194, %195 : vector<16x16xf32>
    %197 = vector.broadcast %16 : f32 to vector<16x16xf32>
    %198 = arith.mulf %197, %196 : vector<16x16xf32>
    %199 = arith.addf %189, %198 : vector<16x16xf32>
    %200 = vector.extract_strided_slice %8 {offsets = [14, 0], sizes = [1, 16], strides = [1, 1]} : vector<32x16xf32> to vector<1x16xf32>
    %201 = vector.extract_strided_slice %9 {offsets = [0, 14], sizes = [16, 1], strides = [1, 1]} : vector<16x32xf32> to vector<16x1xf32>
    %202 = vector.broadcast %200 : vector<1x16xf32> to vector<16x16xf32>
    %203 = vector.broadcast %201 : vector<16x1xf32> to vector<16x16xf32>
    %204 = arith.addf %202, %203 : vector<16x16xf32>
    %cst_46 = arith.constant 0.000000e+00 : f32
    %205 = vector.broadcast %cst_46 : f32 to vector<16x16xf32>
    %206 = arith.maximumf %204, %205 : vector<16x16xf32>
    %207 = vector.broadcast %17 : f32 to vector<16x16xf32>
    %208 = arith.mulf %207, %206 : vector<16x16xf32>
    %209 = arith.addf %199, %208 : vector<16x16xf32>
    %210 = vector.extract_strided_slice %8 {offsets = [15, 0], sizes = [1, 16], strides = [1, 1]} : vector<32x16xf32> to vector<1x16xf32>
    %211 = vector.extract_strided_slice %9 {offsets = [0, 15], sizes = [16, 1], strides = [1, 1]} : vector<16x32xf32> to vector<16x1xf32>
    %212 = vector.broadcast %210 : vector<1x16xf32> to vector<16x16xf32>
    %213 = vector.broadcast %211 : vector<16x1xf32> to vector<16x16xf32>
    %214 = arith.addf %212, %213 : vector<16x16xf32>
    %cst_47 = arith.constant 0.000000e+00 : f32
    %215 = vector.broadcast %cst_47 : f32 to vector<16x16xf32>
    %216 = arith.maximumf %214, %215 : vector<16x16xf32>
    %217 = vector.broadcast %18 : f32 to vector<16x16xf32>
    %218 = arith.mulf %217, %216 : vector<16x16xf32>
    %219 = arith.addf %209, %218 : vector<16x16xf32>
    %cst_48 = arith.constant -1.000000e+30 : f32
    %220 = vector.broadcast %cst_48 : f32 to vector<16x16xf32>
    %221 = arith.select %5, %219, %220 : vector<16x16xi1>, vector<16x16xf32>
    %c1_49 = arith.constant 1 : index
    %c0_50 = arith.constant 0 : index
    %c0_51 = arith.constant 0 : index
    %222 = vector.load %arg10[%c1_49, %c0_50, %c0_51] : memref<4x16x1xf32, #tpu.memory_space<vmem>>, vector<1x16x1xf32>
    %223 = vector.shape_cast %222 : vector<1x16x1xf32> to vector<16x1xf32>
    %cst_52 = arith.constant dense<0xFF800000> : vector<16xf32>
    %224 = vector.multi_reduction <maximumf>, %221, %cst_52 [1] : vector<16x16xf32> to vector<16xf32>
    %225 = vector.shape_cast %224 : vector<16xf32> to vector<16x1xf32>
    %226 = arith.maximumf %223, %225 : vector<16x1xf32>
    %227 = arith.subf %223, %226 : vector<16x1xf32>
    %228 = math.exp %227 : vector<16x1xf32>
    %229 = vector.broadcast %226 : vector<16x1xf32> to vector<16x16xf32>
    %230 = arith.subf %221, %229 : vector<16x16xf32>
    %231 = math.exp %230 : vector<16x16xf32>
    %c1_53 = arith.constant 1 : index
    %c0_54 = arith.constant 0 : index
    %c0_55 = arith.constant 0 : index
    %232 = vector.load %arg11[%c1_53, %c0_54, %c0_55] : memref<4x16x1xf32, #tpu.memory_space<vmem>>, vector<1x16x1xf32>
    %233 = vector.shape_cast %232 : vector<1x16x1xf32> to vector<16x1xf32>
    %234 = arith.mulf %228, %233 : vector<16x1xf32>
    %cst_56 = arith.constant dense<0.000000e+00> : vector<16xf32>
    %235 = vector.multi_reduction <add>, %231, %cst_56 [1] : vector<16x16xf32> to vector<16xf32>
    %236 = vector.shape_cast %235 : vector<16xf32> to vector<16x1xf32>
    %237 = arith.addf %234, %236 : vector<16x1xf32>
    %c1_57 = arith.constant 1 : index
    %c0_58 = arith.constant 0 : index
    %c0_59 = arith.constant 0 : index
    %238 = vector.load %arg11[%c1_57, %c0_58, %c0_59] : memref<4x16x1xf32, #tpu.memory_space<vmem>>, vector<1x16x1xf32>
    %239 = vector.shape_cast %238 : vector<1x16x1xf32> to vector<16x1xf32>
    %240 = vector.shape_cast %237 : vector<16x1xf32> to vector<1x16x1xf32>
    tpu.vector_store %arg11[%c1_57, %c0_58, %c0_59], %240 {strides = array<i32>} : memref<4x16x1xf32, #tpu.memory_space<vmem>>, vector<1x16x1xf32>,
    %c1_60 = arith.constant 1 : index
    %c0_61 = arith.constant 0 : index
    %c0_62 = arith.constant 0 : index
    %241 = vector.load %arg10[%c1_60, %c0_61, %c0_62] : memref<4x16x1xf32, #tpu.memory_space<vmem>>, vector<1x16x1xf32>
    %242 = vector.shape_cast %241 : vector<1x16x1xf32> to vector<16x1xf32>
    %243 = vector.shape_cast %226 : vector<16x1xf32> to vector<1x16x1xf32>
    tpu.vector_store %arg10[%c1_60, %c0_61, %c0_62], %243 {strides = array<i32>} : memref<4x16x1xf32, #tpu.memory_space<vmem>>, vector<1x16x1xf32>,
    %244 = vector.extract_strided_slice %10 {offsets = [0, 8], sizes = [16, 8], strides = [1, 1]} : vector<16x32xf32> to vector<16x8xf32>
    %cst_63 = arith.constant dense<0.000000e+00> : vector<16x8xf32>
    %245 = tpu.matmul %231, %244, %cst_63 {dimension_numbers = #tpu.dot_dimension_numbers<[1], [0], [0], [1], [0, 0, 1, 1], [], []>} : vector<16x16xf32>, vector<16x8xf32>, vector<16x8xf32> -> vector<16x8xf32>
    %c0_64 = arith.constant 0 : index
    %c8 = arith.constant 8 : index
    %246 = vector.load %arg12[%c0_64, %c8] : memref<16x32xf32, #tpu.memory_space<vmem>>, vector<16x8xf32>
    %247 = vector.broadcast %228 : vector<16x1xf32> to vector<16x8xf32>
    %248 = arith.mulf %247, %246 : vector<16x8xf32>
    %249 = arith.addf %248, %245 : vector<16x8xf32>
    %c0_65 = arith.constant 0 : index
    %c8_66 = arith.constant 8 : index
    %250 = vector.load %arg12[%c0_65, %c8_66] : memref<16x32xf32, #tpu.memory_space<vmem>>, vector<16x8xf32>
    tpu.vector_store %arg12[%c0_65, %c8_66], %249 {strides = array<i32>} : memref<16x32xf32, #tpu.memory_space<vmem>>, vector<16x8xf32>,
    %251 = vector.extract_strided_slice %6 {offsets = [2, 0], sizes = [1, 16], strides = [1, 1]} : vector<4x16xf32> to vector<1x16xf32>
    %252 = vector.extract_strided_slice %7 {offsets = [0, 2], sizes = [16, 1], strides = [1, 1]} : vector<16x4xf32> to vector<16x1xf32>
    %253 = vector.broadcast %251 : vector<1x16xf32> to vector<16x16xf32>
    %254 = vector.broadcast %252 : vector<16x1xf32> to vector<16x16xf32>
    %255 = arith.addf %253, %254 : vector<16x16xf32>
    %256 = vector.extract_strided_slice %8 {offsets = [16, 0], sizes = [1, 16], strides = [1, 1]} : vector<32x16xf32> to vector<1x16xf32>
    %257 = vector.extract_strided_slice %9 {offsets = [0, 16], sizes = [16, 1], strides = [1, 1]} : vector<16x32xf32> to vector<16x1xf32>
    %258 = vector.broadcast %256 : vector<1x16xf32> to vector<16x16xf32>
    %259 = vector.broadcast %257 : vector<16x1xf32> to vector<16x16xf32>
    %260 = arith.addf %258, %259 : vector<16x16xf32>
    %cst_67 = arith.constant 0.000000e+00 : f32
    %261 = vector.broadcast %cst_67 : f32 to vector<16x16xf32>
    %262 = arith.maximumf %260, %261 : vector<16x16xf32>
    %263 = vector.broadcast %11 : f32 to vector<16x16xf32>
    %264 = arith.mulf %263, %262 : vector<16x16xf32>
    %265 = arith.addf %255, %264 : vector<16x16xf32>
    %266 = vector.extract_strided_slice %8 {offsets = [17, 0], sizes = [1, 16], strides = [1, 1]} : vector<32x16xf32> to vector<1x16xf32>
    %267 = vector.extract_strided_slice %9 {offsets = [0, 17], sizes = [16, 1], strides = [1, 1]} : vector<16x32xf32> to vector<16x1xf32>
    %268 = vector.broadcast %266 : vector<1x16xf32> to vector<16x16xf32>
    %269 = vector.broadcast %267 : vector<16x1xf32> to vector<16x16xf32>
    %270 = arith.addf %268, %269 : vector<16x16xf32>
    %cst_68 = arith.constant 0.000000e+00 : f32
    %271 = vector.broadcast %cst_68 : f32 to vector<16x16xf32>
    %272 = arith.maximumf %270, %271 : vector<16x16xf32>
    %273 = vector.broadcast %12 : f32 to vector<16x16xf32>
    %274 = arith.mulf %273, %272 : vector<16x16xf32>
    %275 = arith.addf %265, %274 : vector<16x16xf32>
    %276 = vector.extract_strided_slice %8 {offsets = [18, 0], sizes = [1, 16], strides = [1, 1]} : vector<32x16xf32> to vector<1x16xf32>
    %277 = vector.extract_strided_slice %9 {offsets = [0, 18], sizes = [16, 1], strides = [1, 1]} : vector<16x32xf32> to vector<16x1xf32>
    %278 = vector.broadcast %276 : vector<1x16xf32> to vector<16x16xf32>
    %279 = vector.broadcast %277 : vector<16x1xf32> to vector<16x16xf32>
    %280 = arith.addf %278, %279 : vector<16x16xf32>
    %cst_69 = arith.constant 0.000000e+00 : f32
    %281 = vector.broadcast %cst_69 : f32 to vector<16x16xf32>
    %282 = arith.maximumf %280, %281 : vector<16x16xf32>
    %283 = vector.broadcast %13 : f32 to vector<16x16xf32>
    %284 = arith.mulf %283, %282 : vector<16x16xf32>
    %285 = arith.addf %275, %284 : vector<16x16xf32>
    %286 = vector.extract_strided_slice %8 {offsets = [19, 0], sizes = [1, 16], strides = [1, 1]} : vector<32x16xf32> to vector<1x16xf32>
    %287 = vector.extract_strided_slice %9 {offsets = [0, 19], sizes = [16, 1], strides = [1, 1]} : vector<16x32xf32> to vector<16x1xf32>
    %288 = vector.broadcast %286 : vector<1x16xf32> to vector<16x16xf32>
    %289 = vector.broadcast %287 : vector<16x1xf32> to vector<16x16xf32>
    %290 = arith.addf %288, %289 : vector<16x16xf32>
    %cst_70 = arith.constant 0.000000e+00 : f32
    %291 = vector.broadcast %cst_70 : f32 to vector<16x16xf32>
    %292 = arith.maximumf %290, %291 : vector<16x16xf32>
    %293 = vector.broadcast %14 : f32 to vector<16x16xf32>
    %294 = arith.mulf %293, %292 : vector<16x16xf32>
    %295 = arith.addf %285, %294 : vector<16x16xf32>
    %296 = vector.extract_strided_slice %8 {offsets = [20, 0], sizes = [1, 16], strides = [1, 1]} : vector<32x16xf32> to vector<1x16xf32>
    %297 = vector.extract_strided_slice %9 {offsets = [0, 20], sizes = [16, 1], strides = [1, 1]} : vector<16x32xf32> to vector<16x1xf32>
    %298 = vector.broadcast %296 : vector<1x16xf32> to vector<16x16xf32>
    %299 = vector.broadcast %297 : vector<16x1xf32> to vector<16x16xf32>
    %300 = arith.addf %298, %299 : vector<16x16xf32>
    %cst_71 = arith.constant 0.000000e+00 : f32
    %301 = vector.broadcast %cst_71 : f32 to vector<16x16xf32>
    %302 = arith.maximumf %300, %301 : vector<16x16xf32>
    %303 = vector.broadcast %15 : f32 to vector<16x16xf32>
    %304 = arith.mulf %303, %302 : vector<16x16xf32>
    %305 = arith.addf %295, %304 : vector<16x16xf32>
    %306 = vector.extract_strided_slice %8 {offsets = [21, 0], sizes = [1, 16], strides = [1, 1]} : vector<32x16xf32> to vector<1x16xf32>
    %307 = vector.extract_strided_slice %9 {offsets = [0, 21], sizes = [16, 1], strides = [1, 1]} : vector<16x32xf32> to vector<16x1xf32>
    %308 = vector.broadcast %306 : vector<1x16xf32> to vector<16x16xf32>
    %309 = vector.broadcast %307 : vector<16x1xf32> to vector<16x16xf32>
    %310 = arith.addf %308, %309 : vector<16x16xf32>
    %cst_72 = arith.constant 0.000000e+00 : f32
    %311 = vector.broadcast %cst_72 : f32 to vector<16x16xf32>
    %312 = arith.maximumf %310, %311 : vector<16x16xf32>
    %313 = vector.broadcast %16 : f32 to vector<16x16xf32>
    %314 = arith.mulf %313, %312 : vector<16x16xf32>
    %315 = arith.addf %305, %314 : vector<16x16xf32>
    %316 = vector.extract_strided_slice %8 {offsets = [22, 0], sizes = [1, 16], strides = [1, 1]} : vector<32x16xf32> to vector<1x16xf32>
    %317 = vector.extract_strided_slice %9 {offsets = [0, 22], sizes = [16, 1], strides = [1, 1]} : vector<16x32xf32> to vector<16x1xf32>
    %318 = vector.broadcast %316 : vector<1x16xf32> to vector<16x16xf32>
    %319 = vector.broadcast %317 : vector<16x1xf32> to vector<16x16xf32>
    %320 = arith.addf %318, %319 : vector<16x16xf32>
    %cst_73 = arith.constant 0.000000e+00 : f32
    %321 = vector.broadcast %cst_73 : f32 to vector<16x16xf32>
    %322 = arith.maximumf %320, %321 : vector<16x16xf32>
    %323 = vector.broadcast %17 : f32 to vector<16x16xf32>
    %324 = arith.mulf %323, %322 : vector<16x16xf32>
    %325 = arith.addf %315, %324 : vector<16x16xf32>
    %326 = vector.extract_strided_slice %8 {offsets = [23, 0], sizes = [1, 16], strides = [1, 1]} : vector<32x16xf32> to vector<1x16xf32>
    %327 = vector.extract_strided_slice %9 {offsets = [0, 23], sizes = [16, 1], strides = [1, 1]} : vector<16x32xf32> to vector<16x1xf32>
    %328 = vector.broadcast %326 : vector<1x16xf32> to vector<16x16xf32>
    %329 = vector.broadcast %327 : vector<16x1xf32> to vector<16x16xf32>
    %330 = arith.addf %328, %329 : vector<16x16xf32>
    %cst_74 = arith.constant 0.000000e+00 : f32
    %331 = vector.broadcast %cst_74 : f32 to vector<16x16xf32>
    %332 = arith.maximumf %330, %331 : vector<16x16xf32>
    %333 = vector.broadcast %18 : f32 to vector<16x16xf32>
    %334 = arith.mulf %333, %332 : vector<16x16xf32>
    %335 = arith.addf %325, %334 : vector<16x16xf32>
    %cst_75 = arith.constant -1.000000e+30 : f32
    %336 = vector.broadcast %cst_75 : f32 to vector<16x16xf32>
    %337 = arith.select %5, %335, %336 : vector<16x16xi1>, vector<16x16xf32>
    %c2_76 = arith.constant 2 : index
    %c0_77 = arith.constant 0 : index
    %c0_78 = arith.constant 0 : index
    %338 = vector.load %arg10[%c2_76, %c0_77, %c0_78] : memref<4x16x1xf32, #tpu.memory_space<vmem>>, vector<1x16x1xf32>
    %339 = vector.shape_cast %338 : vector<1x16x1xf32> to vector<16x1xf32>
    %cst_79 = arith.constant dense<0xFF800000> : vector<16xf32>
    %340 = vector.multi_reduction <maximumf>, %337, %cst_79 [1] : vector<16x16xf32> to vector<16xf32>
    %341 = vector.shape_cast %340 : vector<16xf32> to vector<16x1xf32>
    %342 = arith.maximumf %339, %341 : vector<16x1xf32>
    %343 = arith.subf %339, %342 : vector<16x1xf32>
    %344 = math.exp %343 : vector<16x1xf32>
    %345 = vector.broadcast %342 : vector<16x1xf32> to vector<16x16xf32>
    %346 = arith.subf %337, %345 : vector<16x16xf32>
    %347 = math.exp %346 : vector<16x16xf32>
    %c2_80 = arith.constant 2 : index
    %c0_81 = arith.constant 0 : index
    %c0_82 = arith.constant 0 : index
    %348 = vector.load %arg11[%c2_80, %c0_81, %c0_82] : memref<4x16x1xf32, #tpu.memory_space<vmem>>, vector<1x16x1xf32>
    %349 = vector.shape_cast %348 : vector<1x16x1xf32> to vector<16x1xf32>
    %350 = arith.mulf %344, %349 : vector<16x1xf32>
    %cst_83 = arith.constant dense<0.000000e+00> : vector<16xf32>
    %351 = vector.multi_reduction <add>, %347, %cst_83 [1] : vector<16x16xf32> to vector<16xf32>
    %352 = vector.shape_cast %351 : vector<16xf32> to vector<16x1xf32>
    %353 = arith.addf %350, %352 : vector<16x1xf32>
    %c2_84 = arith.constant 2 : index
    %c0_85 = arith.constant 0 : index
    %c0_86 = arith.constant 0 : index
    %354 = vector.load %arg11[%c2_84, %c0_85, %c0_86] : memref<4x16x1xf32, #tpu.memory_space<vmem>>, vector<1x16x1xf32>
    %355 = vector.shape_cast %354 : vector<1x16x1xf32> to vector<16x1xf32>
    %356 = vector.shape_cast %353 : vector<16x1xf32> to vector<1x16x1xf32>
    tpu.vector_store %arg11[%c2_84, %c0_85, %c0_86], %356 {strides = array<i32>} : memref<4x16x1xf32, #tpu.memory_space<vmem>>, vector<1x16x1xf32>,
    %c2_87 = arith.constant 2 : index
    %c0_88 = arith.constant 0 : index
    %c0_89 = arith.constant 0 : index
    %357 = vector.load %arg10[%c2_87, %c0_88, %c0_89] : memref<4x16x1xf32, #tpu.memory_space<vmem>>, vector<1x16x1xf32>
    %358 = vector.shape_cast %357 : vector<1x16x1xf32> to vector<16x1xf32>
    %359 = vector.shape_cast %342 : vector<16x1xf32> to vector<1x16x1xf32>
    tpu.vector_store %arg10[%c2_87, %c0_88, %c0_89], %359 {strides = array<i32>} : memref<4x16x1xf32, #tpu.memory_space<vmem>>, vector<1x16x1xf32>,
    %360 = vector.extract_strided_slice %10 {offsets = [0, 16], sizes = [16, 8], strides = [1, 1]} : vector<16x32xf32> to vector<16x8xf32>
    %cst_90 = arith.constant dense<0.000000e+00> : vector<16x8xf32>
    %361 = tpu.matmul %347, %360, %cst_90 {dimension_numbers = #tpu.dot_dimension_numbers<[1], [0], [0], [1], [0, 0, 1, 1], [], []>} : vector<16x16xf32>, vector<16x8xf32>, vector<16x8xf32> -> vector<16x8xf32>
    %c0_91 = arith.constant 0 : index
    %c16 = arith.constant 16 : index
    %362 = vector.load %arg12[%c0_91, %c16] : memref<16x32xf32, #tpu.memory_space<vmem>>, vector<16x8xf32>
    %363 = vector.broadcast %344 : vector<16x1xf32> to vector<16x8xf32>
    %364 = arith.mulf %363, %362 : vector<16x8xf32>
    %365 = arith.addf %364, %361 : vector<16x8xf32>
    %c0_92 = arith.constant 0 : index
    %c16_93 = arith.constant 16 : index
    %366 = vector.load %arg12[%c0_92, %c16_93] : memref<16x32xf32, #tpu.memory_space<vmem>>, vector<16x8xf32>
    tpu.vector_store %arg12[%c0_92, %c16_93], %365 {strides = array<i32>} : memref<16x32xf32, #tpu.memory_space<vmem>>, vector<16x8xf32>,
    %367 = vector.extract_strided_slice %6 {offsets = [3, 0], sizes = [1, 16], strides = [1, 1]} : vector<4x16xf32> to vector<1x16xf32>
    %368 = vector.extract_strided_slice %7 {offsets = [0, 3], sizes = [16, 1], strides = [1, 1]} : vector<16x4xf32> to vector<16x1xf32>
    %369 = vector.broadcast %367 : vector<1x16xf32> to vector<16x16xf32>
    %370 = vector.broadcast %368 : vector<16x1xf32> to vector<16x16xf32>
    %371 = arith.addf %369, %370 : vector<16x16xf32>
    %372 = vector.extract_strided_slice %8 {offsets = [24, 0], sizes = [1, 16], strides = [1, 1]} : vector<32x16xf32> to vector<1x16xf32>
    %373 = vector.extract_strided_slice %9 {offsets = [0, 24], sizes = [16, 1], strides = [1, 1]} : vector<16x32xf32> to vector<16x1xf32>
    %374 = vector.broadcast %372 : vector<1x16xf32> to vector<16x16xf32>
    %375 = vector.broadcast %373 : vector<16x1xf32> to vector<16x16xf32>
    %376 = arith.addf %374, %375 : vector<16x16xf32>
    %cst_94 = arith.constant 0.000000e+00 : f32
    %377 = vector.broadcast %cst_94 : f32 to vector<16x16xf32>
    %378 = arith.maximumf %376, %377 : vector<16x16xf32>
    %379 = vector.broadcast %11 : f32 to vector<16x16xf32>
    %380 = arith.mulf %379, %378 : vector<16x16xf32>
    %381 = arith.addf %371, %380 : vector<16x16xf32>
    %382 = vector.extract_strided_slice %8 {offsets = [25, 0], sizes = [1, 16], strides = [1, 1]} : vector<32x16xf32> to vector<1x16xf32>
    %383 = vector.extract_strided_slice %9 {offsets = [0, 25], sizes = [16, 1], strides = [1, 1]} : vector<16x32xf32> to vector<16x1xf32>
    %384 = vector.broadcast %382 : vector<1x16xf32> to vector<16x16xf32>
    %385 = vector.broadcast %383 : vector<16x1xf32> to vector<16x16xf32>
    %386 = arith.addf %384, %385 : vector<16x16xf32>
    %cst_95 = arith.constant 0.000000e+00 : f32
    %387 = vector.broadcast %cst_95 : f32 to vector<16x16xf32>
    %388 = arith.maximumf %386, %387 : vector<16x16xf32>
    %389 = vector.broadcast %12 : f32 to vector<16x16xf32>
    %390 = arith.mulf %389, %388 : vector<16x16xf32>
    %391 = arith.addf %381, %390 : vector<16x16xf32>
    %392 = vector.extract_strided_slice %8 {offsets = [26, 0], sizes = [1, 16], strides = [1, 1]} : vector<32x16xf32> to vector<1x16xf32>
    %393 = vector.extract_strided_slice %9 {offsets = [0, 26], sizes = [16, 1], strides = [1, 1]} : vector<16x32xf32> to vector<16x1xf32>
    %394 = vector.broadcast %392 : vector<1x16xf32> to vector<16x16xf32>
    %395 = vector.broadcast %393 : vector<16x1xf32> to vector<16x16xf32>
    %396 = arith.addf %394, %395 : vector<16x16xf32>
    %cst_96 = arith.constant 0.000000e+00 : f32
    %397 = vector.broadcast %cst_96 : f32 to vector<16x16xf32>
    %398 = arith.maximumf %396, %397 : vector<16x16xf32>
    %399 = vector.broadcast %13 : f32 to vector<16x16xf32>
    %400 = arith.mulf %399, %398 : vector<16x16xf32>
    %401 = arith.addf %391, %400 : vector<16x16xf32>
    %402 = vector.extract_strided_slice %8 {offsets = [27, 0], sizes = [1, 16], strides = [1, 1]} : vector<32x16xf32> to vector<1x16xf32>
    %403 = vector.extract_strided_slice %9 {offsets = [0, 27], sizes = [16, 1], strides = [1, 1]} : vector<16x32xf32> to vector<16x1xf32>
    %404 = vector.broadcast %402 : vector<1x16xf32> to vector<16x16xf32>
    %405 = vector.broadcast %403 : vector<16x1xf32> to vector<16x16xf32>
    %406 = arith.addf %404, %405 : vector<16x16xf32>
    %cst_97 = arith.constant 0.000000e+00 : f32
    %407 = vector.broadcast %cst_97 : f32 to vector<16x16xf32>
    %408 = arith.maximumf %406, %407 : vector<16x16xf32>
    %409 = vector.broadcast %14 : f32 to vector<16x16xf32>
    %410 = arith.mulf %409, %408 : vector<16x16xf32>
    %411 = arith.addf %401, %410 : vector<16x16xf32>
    %412 = vector.extract_strided_slice %8 {offsets = [28, 0], sizes = [1, 16], strides = [1, 1]} : vector<32x16xf32> to vector<1x16xf32>
    %413 = vector.extract_strided_slice %9 {offsets = [0, 28], sizes = [16, 1], strides = [1, 1]} : vector<16x32xf32> to vector<16x1xf32>
    %414 = vector.broadcast %412 : vector<1x16xf32> to vector<16x16xf32>
    %415 = vector.broadcast %413 : vector<16x1xf32> to vector<16x16xf32>
    %416 = arith.addf %414, %415 : vector<16x16xf32>
    %cst_98 = arith.constant 0.000000e+00 : f32
    %417 = vector.broadcast %cst_98 : f32 to vector<16x16xf32>
    %418 = arith.maximumf %416, %417 : vector<16x16xf32>
    %419 = vector.broadcast %15 : f32 to vector<16x16xf32>
    %420 = arith.mulf %419, %418 : vector<16x16xf32>
    %421 = arith.addf %411, %420 : vector<16x16xf32>
    %422 = vector.extract_strided_slice %8 {offsets = [29, 0], sizes = [1, 16], strides = [1, 1]} : vector<32x16xf32> to vector<1x16xf32>
    %423 = vector.extract_strided_slice %9 {offsets = [0, 29], sizes = [16, 1], strides = [1, 1]} : vector<16x32xf32> to vector<16x1xf32>
    %424 = vector.broadcast %422 : vector<1x16xf32> to vector<16x16xf32>
    %425 = vector.broadcast %423 : vector<16x1xf32> to vector<16x16xf32>
    %426 = arith.addf %424, %425 : vector<16x16xf32>
    %cst_99 = arith.constant 0.000000e+00 : f32
    %427 = vector.broadcast %cst_99 : f32 to vector<16x16xf32>
    %428 = arith.maximumf %426, %427 : vector<16x16xf32>
    %429 = vector.broadcast %16 : f32 to vector<16x16xf32>
    %430 = arith.mulf %429, %428 : vector<16x16xf32>
    %431 = arith.addf %421, %430 : vector<16x16xf32>
    %432 = vector.extract_strided_slice %8 {offsets = [30, 0], sizes = [1, 16], strides = [1, 1]} : vector<32x16xf32> to vector<1x16xf32>
    %433 = vector.extract_strided_slice %9 {offsets = [0, 30], sizes = [16, 1], strides = [1, 1]} : vector<16x32xf32> to vector<16x1xf32>
    %434 = vector.broadcast %432 : vector<1x16xf32> to vector<16x16xf32>
    %435 = vector.broadcast %433 : vector<16x1xf32> to vector<16x16xf32>
    %436 = arith.addf %434, %435 : vector<16x16xf32>
    %cst_100 = arith.constant 0.000000e+00 : f32
    %437 = vector.broadcast %cst_100 : f32 to vector<16x16xf32>
    %438 = arith.maximumf %436, %437 : vector<16x16xf32>
    %439 = vector.broadcast %17 : f32 to vector<16x16xf32>
    %440 = arith.mulf %439, %438 : vector<16x16xf32>
    %441 = arith.addf %431, %440 : vector<16x16xf32>
    %442 = vector.extract_strided_slice %8 {offsets = [31, 0], sizes = [1, 16], strides = [1, 1]} : vector<32x16xf32> to vector<1x16xf32>
    %443 = vector.extract_strided_slice %9 {offsets = [0, 31], sizes = [16, 1], strides = [1, 1]} : vector<16x32xf32> to vector<16x1xf32>
    %444 = vector.broadcast %442 : vector<1x16xf32> to vector<16x16xf32>
    %445 = vector.broadcast %443 : vector<16x1xf32> to vector<16x16xf32>
    %446 = arith.addf %444, %445 : vector<16x16xf32>
    %cst_101 = arith.constant 0.000000e+00 : f32
    %447 = vector.broadcast %cst_101 : f32 to vector<16x16xf32>
    %448 = arith.maximumf %446, %447 : vector<16x16xf32>
    %449 = vector.broadcast %18 : f32 to vector<16x16xf32>
    %450 = arith.mulf %449, %448 : vector<16x16xf32>
    %451 = arith.addf %441, %450 : vector<16x16xf32>
    %cst_102 = arith.constant -1.000000e+30 : f32
    %452 = vector.broadcast %cst_102 : f32 to vector<16x16xf32>
    %453 = arith.select %5, %451, %452 : vector<16x16xi1>, vector<16x16xf32>
    %c3_103 = arith.constant 3 : index
    %c0_104 = arith.constant 0 : index
    %c0_105 = arith.constant 0 : index
    %454 = vector.load %arg10[%c3_103, %c0_104, %c0_105] : memref<4x16x1xf32, #tpu.memory_space<vmem>>, vector<1x16x1xf32>
    %455 = vector.shape_cast %454 : vector<1x16x1xf32> to vector<16x1xf32>
    %cst_106 = arith.constant dense<0xFF800000> : vector<16xf32>
    %456 = vector.multi_reduction <maximumf>, %453, %cst_106 [1] : vector<16x16xf32> to vector<16xf32>
    %457 = vector.shape_cast %456 : vector<16xf32> to vector<16x1xf32>
    %458 = arith.maximumf %455, %457 : vector<16x1xf32>
    %459 = arith.subf %455, %458 : vector<16x1xf32>
    %460 = math.exp %459 : vector<16x1xf32>
    %461 = vector.broadcast %458 : vector<16x1xf32> to vector<16x16xf32>
    %462 = arith.subf %453, %461 : vector<16x16xf32>
    %463 = math.exp %462 : vector<16x16xf32>
    %c3_107 = arith.constant 3 : index
    %c0_108 = arith.constant 0 : index
    %c0_109 = arith.constant 0 : index
    %464 = vector.load %arg11[%c3_107, %c0_108, %c0_109] : memref<4x16x1xf32, #tpu.memory_space<vmem>>, vector<1x16x1xf32>
    %465 = vector.shape_cast %464 : vector<1x16x1xf32> to vector<16x1xf32>
    %466 = arith.mulf %460, %465 : vector<16x1xf32>
    %cst_110 = arith.constant dense<0.000000e+00> : vector<16xf32>
    %467 = vector.multi_reduction <add>, %463, %cst_110 [1] : vector<16x16xf32> to vector<16xf32>
    %468 = vector.shape_cast %467 : vector<16xf32> to vector<16x1xf32>
    %469 = arith.addf %466, %468 : vector<16x1xf32>
    %c3_111 = arith.constant 3 : index
    %c0_112 = arith.constant 0 : index
    %c0_113 = arith.constant 0 : index
    %470 = vector.load %arg11[%c3_111, %c0_112, %c0_113] : memref<4x16x1xf32, #tpu.memory_space<vmem>>, vector<1x16x1xf32>
    %471 = vector.shape_cast %470 : vector<1x16x1xf32> to vector<16x1xf32>
    %472 = vector.shape_cast %469 : vector<16x1xf32> to vector<1x16x1xf32>
    tpu.vector_store %arg11[%c3_111, %c0_112, %c0_113], %472 {strides = array<i32>} : memref<4x16x1xf32, #tpu.memory_space<vmem>>, vector<1x16x1xf32>,
    %c3_114 = arith.constant 3 : index
    %c0_115 = arith.constant 0 : index
    %c0_116 = arith.constant 0 : index
    %473 = vector.load %arg10[%c3_114, %c0_115, %c0_116] : memref<4x16x1xf32, #tpu.memory_space<vmem>>, vector<1x16x1xf32>
    %474 = vector.shape_cast %473 : vector<1x16x1xf32> to vector<16x1xf32>
    %475 = vector.shape_cast %458 : vector<16x1xf32> to vector<1x16x1xf32>
    tpu.vector_store %arg10[%c3_114, %c0_115, %c0_116], %475 {strides = array<i32>} : memref<4x16x1xf32, #tpu.memory_space<vmem>>, vector<1x16x1xf32>,
    %476 = vector.extract_strided_slice %10 {offsets = [0, 24], sizes = [16, 8], strides = [1, 1]} : vector<16x32xf32> to vector<16x8xf32>
    %cst_117 = arith.constant dense<0.000000e+00> : vector<16x8xf32>
    %477 = tpu.matmul %463, %476, %cst_117 {dimension_numbers = #tpu.dot_dimension_numbers<[1], [0], [0], [1], [0, 0, 1, 1], [], []>} : vector<16x16xf32>, vector<16x8xf32>, vector<16x8xf32> -> vector<16x8xf32>
    %c0_118 = arith.constant 0 : index
    %c24 = arith.constant 24 : index
    %478 = vector.load %arg12[%c0_118, %c24] : memref<16x32xf32, #tpu.memory_space<vmem>>, vector<16x8xf32>
    %479 = vector.broadcast %460 : vector<16x1xf32> to vector<16x8xf32>
    %480 = arith.mulf %479, %478 : vector<16x8xf32>
    %481 = arith.addf %480, %477 : vector<16x8xf32>
    %c0_119 = arith.constant 0 : index
    %c24_120 = arith.constant 24 : index
    %482 = vector.load %arg12[%c0_119, %c24_120] : memref<16x32xf32, #tpu.memory_space<vmem>>, vector<16x8xf32>
    tpu.vector_store %arg12[%c0_119, %c24_120], %481 {strides = array<i32>} : memref<16x32xf32, #tpu.memory_space<vmem>>, vector<16x8xf32>,
    %c0_i32_121 = arith.constant 0 : i32
    %483 = arith.cmpi eq, %arg1, %c0_i32_121 : i32
    %484 = arith.extui %483 : i1 to i32
    %c0_i32_122 = arith.constant 0 : i32
    %485 = arith.cmpi ne, %484, %c0_i32_122 : i32
    scf.if %485 {
      %c0_123 = arith.constant 0 : index
      %c0_124 = arith.constant 0 : index
      %c0_125 = arith.constant 0 : index
      %486 = vector.load %arg11[%c0_123, %c0_124, %c0_125] : memref<4x16x1xf32, #tpu.memory_space<vmem>>, vector<1x16x1xf32>
      %487 = vector.shape_cast %486 : vector<1x16x1xf32> to vector<16x1xf32>
      %488 = tpu.reciprocal %487 {approx = true} : vector<16x1xf32> -> vector<16x1xf32>
      %c0_126 = arith.constant 0 : index
      %c0_127 = arith.constant 0 : index
      %489 = vector.load %arg12[%c0_126, %c0_127] : memref<16x32xf32, #tpu.memory_space<vmem>>, vector<16x8xf32>
      %490 = vector.broadcast %488 : vector<16x1xf32> to vector<16x8xf32>
      %491 = arith.mulf %489, %490 : vector<16x8xf32>
      %cst_128 = arith.constant 0.000000e+00 : f32
      %492 = vector.broadcast %cst_128 : f32 to vector<16x8xf32>
      %493 = arith.cmpf ogt, %491, %492 : vector<16x8xf32>
      %cst_129 = arith.constant 0.000000e+00 : f32
      %494 = vector.broadcast %cst_129 : f32 to vector<16x8xf32>
      %495 = arith.minimumf %491, %494 : vector<16x8xf32>
      %496 = math.exp %495 : vector<16x8xf32>
      %cst_130 = arith.constant 1.000000e+00 : f32
      %497 = vector.broadcast %cst_130 : f32 to vector<16x8xf32>
      %498 = arith.subf %496, %497 : vector<16x8xf32>
      %499 = arith.select %493, %491, %498 : vector<16x8xi1>, vector<16x8xf32>
      %c0_131 = arith.constant 0 : index
      %c0_132 = arith.constant 0 : index
      %500 = vector.load %arg9[%c0_131, %c0_132] : memref<16x32xf32, #tpu.memory_space<vmem>>, vector<16x8xf32>
      tpu.vector_store %arg9[%c0_131, %c0_132], %499 {strides = array<i32>} : memref<16x32xf32, #tpu.memory_space<vmem>>, vector<16x8xf32>,
      %c1_133 = arith.constant 1 : index
      %c0_134 = arith.constant 0 : index
      %c0_135 = arith.constant 0 : index
      %501 = vector.load %arg11[%c1_133, %c0_134, %c0_135] : memref<4x16x1xf32, #tpu.memory_space<vmem>>, vector<1x16x1xf32>
      %502 = vector.shape_cast %501 : vector<1x16x1xf32> to vector<16x1xf32>
      %503 = tpu.reciprocal %502 {approx = true} : vector<16x1xf32> -> vector<16x1xf32>
      %c0_136 = arith.constant 0 : index
      %c8_137 = arith.constant 8 : index
      %504 = vector.load %arg12[%c0_136, %c8_137] : memref<16x32xf32, #tpu.memory_space<vmem>>, vector<16x8xf32>
      %505 = vector.broadcast %503 : vector<16x1xf32> to vector<16x8xf32>
      %506 = arith.mulf %504, %505 : vector<16x8xf32>
      %cst_138 = arith.constant 0.000000e+00 : f32
      %507 = vector.broadcast %cst_138 : f32 to vector<16x8xf32>
      %508 = arith.cmpf ogt, %506, %507 : vector<16x8xf32>
      %cst_139 = arith.constant 0.000000e+00 : f32
      %509 = vector.broadcast %cst_139 : f32 to vector<16x8xf32>
      %510 = arith.minimumf %506, %509 : vector<16x8xf32>
      %511 = math.exp %510 : vector<16x8xf32>
      %cst_140 = arith.constant 1.000000e+00 : f32
      %512 = vector.broadcast %cst_140 : f32 to vector<16x8xf32>
      %513 = arith.subf %511, %512 : vector<16x8xf32>
      %514 = arith.select %508, %506, %513 : vector<16x8xi1>, vector<16x8xf32>
      %c0_141 = arith.constant 0 : index
      %c8_142 = arith.constant 8 : index
      %515 = vector.load %arg9[%c0_141, %c8_142] : memref<16x32xf32, #tpu.memory_space<vmem>>, vector<16x8xf32>
      tpu.vector_store %arg9[%c0_141, %c8_142], %514 {strides = array<i32>} : memref<16x32xf32, #tpu.memory_space<vmem>>, vector<16x8xf32>,
      %c2_143 = arith.constant 2 : index
      %c0_144 = arith.constant 0 : index
      %c0_145 = arith.constant 0 : index
      %516 = vector.load %arg11[%c2_143, %c0_144, %c0_145] : memref<4x16x1xf32, #tpu.memory_space<vmem>>, vector<1x16x1xf32>
      %517 = vector.shape_cast %516 : vector<1x16x1xf32> to vector<16x1xf32>
      %518 = tpu.reciprocal %517 {approx = true} : vector<16x1xf32> -> vector<16x1xf32>
      %c0_146 = arith.constant 0 : index
      %c16_147 = arith.constant 16 : index
      %519 = vector.load %arg12[%c0_146, %c16_147] : memref<16x32xf32, #tpu.memory_space<vmem>>, vector<16x8xf32>
      %520 = vector.broadcast %518 : vector<16x1xf32> to vector<16x8xf32>
      %521 = arith.mulf %519, %520 : vector<16x8xf32>
      %cst_148 = arith.constant 0.000000e+00 : f32
      %522 = vector.broadcast %cst_148 : f32 to vector<16x8xf32>
      %523 = arith.cmpf ogt, %521, %522 : vector<16x8xf32>
      %cst_149 = arith.constant 0.000000e+00 : f32
      %524 = vector.broadcast %cst_149 : f32 to vector<16x8xf32>
      %525 = arith.minimumf %521, %524 : vector<16x8xf32>
      %526 = math.exp %525 : vector<16x8xf32>
      %cst_150 = arith.constant 1.000000e+00 : f32
      %527 = vector.broadcast %cst_150 : f32 to vector<16x8xf32>
      %528 = arith.subf %526, %527 : vector<16x8xf32>
      %529 = arith.select %523, %521, %528 : vector<16x8xi1>, vector<16x8xf32>
      %c0_151 = arith.constant 0 : index
      %c16_152 = arith.constant 16 : index
      %530 = vector.load %arg9[%c0_151, %c16_152] : memref<16x32xf32, #tpu.memory_space<vmem>>, vector<16x8xf32>
      tpu.vector_store %arg9[%c0_151, %c16_152], %529 {strides = array<i32>} : memref<16x32xf32, #tpu.memory_space<vmem>>, vector<16x8xf32>,
      %c3_153 = arith.constant 3 : index
      %c0_154 = arith.constant 0 : index
      %c0_155 = arith.constant 0 : index
      %531 = vector.load %arg11[%c3_153, %c0_154, %c0_155] : memref<4x16x1xf32, #tpu.memory_space<vmem>>, vector<1x16x1xf32>
      %532 = vector.shape_cast %531 : vector<1x16x1xf32> to vector<16x1xf32>
      %533 = tpu.reciprocal %532 {approx = true} : vector<16x1xf32> -> vector<16x1xf32>
      %c0_156 = arith.constant 0 : index
      %c24_157 = arith.constant 24 : index
      %534 = vector.load %arg12[%c0_156, %c24_157] : memref<16x32xf32, #tpu.memory_space<vmem>>, vector<16x8xf32>
      %535 = vector.broadcast %533 : vector<16x1xf32> to vector<16x8xf32>
      %536 = arith.mulf %534, %535 : vector<16x8xf32>
      %cst_158 = arith.constant 0.000000e+00 : f32
      %537 = vector.broadcast %cst_158 : f32 to vector<16x8xf32>
      %538 = arith.cmpf ogt, %536, %537 : vector<16x8xf32>
      %cst_159 = arith.constant 0.000000e+00 : f32
      %539 = vector.broadcast %cst_159 : f32 to vector<16x8xf32>
      %540 = arith.minimumf %536, %539 : vector<16x8xf32>
      %541 = math.exp %540 : vector<16x8xf32>
      %cst_160 = arith.constant 1.000000e+00 : f32
      %542 = vector.broadcast %cst_160 : f32 to vector<16x8xf32>
      %543 = arith.subf %541, %542 : vector<16x8xf32>
      %544 = arith.select %538, %536, %543 : vector<16x8xi1>, vector<16x8xf32>
      %c0_161 = arith.constant 0 : index
      %c24_162 = arith.constant 24 : index
      %545 = vector.load %arg9[%c0_161, %c24_162] : memref<16x32xf32, #tpu.memory_space<vmem>>, vector<16x8xf32>
      tpu.vector_store %arg9[%c0_161, %c24_162], %544 {strides = array<i32>} : memref<16x32xf32, #tpu.memory_space<vmem>>, vector<16x8xf32>,
    } else {
    }
    return
  }
  func.func @transform_0(%arg0: i32, %arg1: i32) -> i32 {
    %c0_i32 = arith.constant 0 : i32
    %c0_i32_0 = arith.constant 0 : i32
    return %c0_i32 : i32
  }
  func.func @transform_1(%arg0: i32, %arg1: i32) -> (i32, i32) {
    %c0_i32 = arith.constant 0 : i32
    %c0_i32_0 = arith.constant 0 : i32
    return %c0_i32, %arg1 : i32, i32
  }
  func.func @transform_2(%arg0: i32, %arg1: i32) -> (i32, i32) {
    %c0_i32 = arith.constant 0 : i32
    %c0_i32_0 = arith.constant 0 : i32
    return %arg0, %c0_i32 : i32, i32
  }
  func.func @transform_3(%arg0: i32, %arg1: i32) -> (i32, i32) {
    %c0_i32 = arith.constant 0 : i32
    %c0_i32_0 = arith.constant 0 : i32
    return %c0_i32, %arg1 : i32, i32
  }
  func.func @transform_4(%arg0: i32, %arg1: i32) -> (i32, i32) {
    %c0_i32 = arith.constant 0 : i32
    %c0_i32_0 = arith.constant 0 : i32
    return %arg0, %c0_i32 : i32, i32
  }
  func.func @transform_5(%arg0: i32, %arg1: i32) -> (i32, i32) {
    %c0_i32 = arith.constant 0 : i32
    %c0_i32_0 = arith.constant 0 : i32
    return %arg1, %c0_i32 : i32, i32
  }
  func.func @transform_6(%arg0: i32, %arg1: i32) -> (i32, i32) {
    %c0_i32 = arith.constant 0 : i32
    return %arg0, %arg1 : i32, i32
  }
  func.func @transform_7(%arg0: i32, %arg1: i32) -> (i32, i32) {
    %c0_i32 = arith.constant 0 : i32
    %c0_i32_0 = arith.constant 0 : i32
    return %arg0, %c0_i32 : i32, i32
  }
}

</mosaic_0001>

<bundles_post_ra>
// kernel: tpu_custom_call.1
= control target key start
LH: loop header
LB: loop body
LE: loop exit
PB: predicated region body
PF: predicated region fallthrough
CT: control target
= control target key end

     0   :  { %12 = vsyncpa [#allocation7], 0  ;;  %s2270_s0 = inlined_call_operand.vmem [shape: f32[8], index: 0, kind: input, shape index: {}]   ;;  %s2271_s1 = inlined_call_operand.vmem [shape: f32[4,16], index: 1, kind: input, shape index: {}]   ;;  %s2272_s2 = inlined_call_operand.vmem [shape: f32[16,4], index: 2, kind: input, shape index: {}]   ;;  %s2273_s3 = inlined_call_operand.vmem [shape: f32[32,16], index: 3, kind: input, shape index: {}]   ;;  %s2274_s4 = inlined_call_operand.vmem [shape: f32[16,32], index: 4, kind: input, shape index: {}]   ;;  %s2275_s5 = inlined_call_operand.vmem [shape: f32[16,32], index: 5, kind: input, shape index: {}]   ;;  %s2276_s6 = inlined_call_operand.vmem [shape: s8[16,16], index: 6, kind: input, shape index: {}]   ;;  %s2277_s7 = inlined_call_operand.hbm [shape: f32[16,32], index: 7, kind: output, shape index: {}]  }
   0x1   :  { %13 = vsyncpa [#allocation6], 0  ;;  %s19_s26 = sshll.u32 %s2270_s0, 4  ;;  %s1546_s27 = smov [#allocation5]   ;;  %s20_s26 = int_to_ptr.vmem [resolvable:$true] %s19_s26 }
   0x2   :  { %22 = dma.vmem_to_smem %s20_s26, 16, %s1546_s27, [#allocation7]  }
   0x3   :  { %1542 = dma.done.wait [#allocation7], 16  }
   0x4   :  { %1543 = vsyncadd [#allocation7], 4294967280 }
   0x5   :  { %39 = sfence }
   0x6   :  { %v1635_v0 = vld [vmem:[%s2274_s4] sm:$0xff]  ;;  %v1547_v2 = vmov 1   ;;  %v1548_v3 = vmov 0   ;;  %v1650_v4 = vld [vmem:[%s2274_s4 + $0x8] sm:$0xff]  ;;  %v1549_v6 = vmov 3   ;;  %v1550_v7 = vmov 2  }
   0x7   :  { %v1640_v1 = vld [vmem:[%s2272_s2] sm:$0xff]  ;;  %1357 = vset.pattern.permute.xlu2 %v1547_v2  ;;  %1356 = vset.pattern.permute.xlu1 %v1548_v3  ;;  %v1655_v5 = vld [vmem:[%s2272_s2 + $0x8] sm:$0xff]  ;;  %v1551_v8 = vmov 4   ;;  %v1552_v9 = vmov 7   ;;  %v1553_v10 = vmov 5   ;;  %v1554_v11 = vmov 8  }
   0x8   :  { %1355 = vset.pattern.permute.xlu0 %v1548_v3  ;;  %124 = vperm.xlu2 %1357, %v1635_v0   ;;  %v1555_v12 = vmov 6   ;;  %v1556_v13 = vmov 14   ;;  %v1557_v14 = vmov 9   ;;  %v1558_v15 = vmov 10   ;;  %v1698_v28 = vld [vmem:[%s2273_s3] sm:$0xff]  ;;  %s81_s12 = sld [smem:[#allocation5]] }
   0x9   :  { %105 = vperm.xlu1 %1356, %v1635_v0   ;;  %92 = vperm.xlu0 %1355, %v1640_v1   ;;  %v1559_v16 = vmov 11   ;;  %v1560_v17 = vmov 12   ;;  %v1561_v18 = vmov 13   ;;  %v102_v29 = vperm.slane %v1698_v28, 0  ;;  %s1290_s13 = sld [smem:[#allocation5 + $0x2]]  ;;  %s1583_s10 = smov 104  }
   0xa   :  { %v140_v34 = vperm.slane %v1698_v28, 2  ;;  %v122_v35 = vperm.slane %v1698_v28, 1  ;;  %s1289_s14 = sld [smem:[#allocation5 + $0x1]]  ;;  %v1710_v37 = vld [vmem:[%s2271_s1] sm:$0xf]  ;;  %v158_v39 = vperm.slane %v1698_v28, 3 }
   0xb   :  { %s1291_s17 = sld [smem:[#allocation5 + $0x3]]  ;;  %v89_v42 = vperm.slane %v1710_v37, 0  ;;  %v176_v50 = vperm.slane %v1698_v28, 4  ;;  %v194_v54 = vperm.slane %v1698_v28, 5  ;;  %vm258_vm3 = vcmask 130048   ;;  %s1584_s11 = smov 8  }
   0xc   :  { %s1292_s1 = sld [smem:[#allocation5 + $0x4]]  ;;  %vm46_vm5 = vcmask 7168   ;;  %vm63_vm6 = vcmask 261120   ;;  %vm351_vm7 = vcmask 64512   ;;  %s1585_s2 = smov 16   ;;  %vm614_vm8 = vcmask 130112  }
   0xd   :  { %s1293_s18 = sld [smem:[#allocation5 + $0x5]]  ;;  %s1586_s4 = smov 24   ;;  %vm875_vm9 = vcmask 195712   ;;  %vm1136_vm10 = vcmask 261312  }
   0xe   :  { %v1715_v41 = vstv %s81_s12  ;;  %s1294_s19 = sld [smem:[#allocation5 + $0x6]]  ;;  %s1587_s15 = smov [#allocation8]  }
   0xf   :  { %v1722_v52 = vstv %s1290_s13  ;;  %s1295_s24 = sld [smem:[#allocation5 + $0x7]]  ;;  %s1274_s16 = sshll.u32 %s1587_s15, 4  ;;  %s1275_s16 = int_to_ptr.vmem [resolvable:$true] %s1274_s16 }
  0x10   :  { %128 = vperm.xlu2 %1357, %v1650_v4   ;;  %v1725_v56 = vstv %s1289_s14  ;;  %s1276_s14 = sshll.u32 %s2277_s7, 4  ;;  %s1277_s14 = int_to_ptr.hbm [resolvable:$true] %s1276_s14 }
  0x11   :  { %110 = vperm.xlu1 %1356, %v1650_v4   ;;  %97 = vperm.xlu0 %1355, %v1655_v5   ;;  %v1729_v61 = vstv %s1291_s17  ;;  %s1588_s17 = smov 128  }
  0x18   :  { %1359 = vset.pattern.permute.xlu2 %v1549_v6 }
  0x19   :  { %1358 = vset.pattern.permute.xlu1 %v1550_v7  ;;  %1362 = vset.pattern.permute.xlu0 %v1551_v8 }
  0x1a   :  { %160 = vperm.xlu2 %1359, %v1635_v0   ;;  %146 = vperm.xlu1 %1358, %v1650_v4  }
  0x1b   :  { %182 = vperm.xlu0 %1362, %v1650_v4  }
  0x22   :  { %1361 = vset.pattern.permute.xlu2 %v1551_v8  ;;  %1360 = vset.pattern.permute.xlu1 %v1549_v6 }
  0x23   :  { %1367 = vset.pattern.permute.xlu0 %v1552_v9  ;;  %178 = vperm.xlu2 %1361, %v1635_v0  }
  0x24   :  { %164 = vperm.xlu1 %1360, %v1650_v4   ;;  %232 = vperm.xlu0 %1367, %v1635_v0  }
  0x2b   :  { %1364 = vset.pattern.permute.xlu2 %v1553_v10 }
  0x2c   :  { %1363 = vset.pattern.permute.xlu1 %v1553_v10  ;;  %1372 = vset.pattern.permute.xlu0 %v1554_v11 }
  0x2d   :  { %200 = vperm.xlu2 %1364, %v1650_v4   ;;  %196 = vperm.xlu1 %1363, %v1635_v0  }
  0x2e   :  { %371 = vperm.xlu0 %1372, %v1650_v4  }
  0x35   :  { %1366 = vset.pattern.permute.xlu2 %v1555_v12  ;;  %1365 = vset.pattern.permute.xlu1 %v1555_v12 }
  0x36   :  { %1383 = vset.pattern.permute.xlu0 %v1556_v13  ;;  %218 = vperm.xlu2 %1366, %v1650_v4  }
  0x37   :  { %214 = vperm.xlu1 %1365, %v1635_v0   ;;  %469 = vperm.xlu0 %1383, %v1635_v0  }
  0x3e   :  { %1369 = vset.pattern.permute.xlu2 %v1547_v2 }
  0x3f   :  { %1368 = vset.pattern.permute.xlu1 %v1552_v9  ;;  %1384 = vset.pattern.permute.xlu0 %v1550_v7 }
  0x40   :  { %236 = vperm.xlu1 %1368, %v1650_v4   ;;  %356 = vperm.xlu2 %1369, %v1640_v1  }
  0x41   :  { %142 = vperm.xlu0 %1384, %v1635_v0  }
  0x48   :  { %1370 = vset.pattern.permute.xlu1 %v1547_v2  ;;  %1371 = vset.pattern.permute.xlu2 %v1554_v11  ;;  %v212_v2 = vperm.slane %v1698_v28, 6 }
  0x49   :  { %360 = vperm.xlu1 %1370, %v1655_v5   ;;  %367 = vperm.xlu2 %1371, %v1635_v0  }
  0x51   :  { %1373 = vset.pattern.permute.xlu1 %v1557_v14  ;;  %1374 = vset.pattern.permute.xlu2 %v1557_v14 }
  0x52   :  { %384 = vperm.xlu1 %1373, %v1635_v0   ;;  %388 = vperm.xlu2 %1374, %v1650_v4  }
  0x5a   :  { %1375 = vset.pattern.permute.xlu1 %v1558_v15  ;;  %1376 = vset.pattern.permute.xlu2 %v1558_v15  ;;  %v1735_v15 = vstv %s1292_s1 }
  0x5b   :  { %401 = vperm.xlu1 %1375, %v1635_v0   ;;  %405 = vperm.xlu2 %1376, %v1650_v4  }
  0x62   :  { %v125_v19 = vpop.permute.xlu2 %124 }
  0x63   :  { %1377 = vset.pattern.permute.xlu1 %v1559_v16  ;;  %1378 = vset.pattern.permute.xlu2 %v1559_v16 }
  0x64   :  { %418 = vperm.xlu1 %1377, %v1635_v0   ;;  %422 = vperm.xlu2 %1378, %v1650_v4  }
  0x6a   :  { %v129_v22 = vpop.permute.xlu2 %128 }
  0x6b   :  { %v132_v38 = vadd.f32 %v129_v22, %v122_v35  ;;  %v67_v22 = vld [vmem:[%s2276_s6 + $0x2] sm:$0x3] }
  0x6c   :  { %1379 = vset.pattern.permute.xlu1 %v1560_v17  ;;  %1380 = vset.pattern.permute.xlu2 %v1560_v17  ;;  %vm69_vm0 = vnez %v67_v22 }
  0x6d   :  { %435 = vperm.xlu1 %1379, %v1635_v0   ;;  %439 = vperm.xlu2 %1380, %v1650_v4   ;;  %v134_v48 = vmax.f32 %v132_v38, 0.0  ;;  %v1752_v38 = vstv %s1294_s19 }
  0x6f   :  { %v137_v57 = vmul.f32 %v1725_v56, %v134_v48 }
  0x74   :  { %v1693_v25 = vpop.permute.xlu2 %160 }
  0x75   :  { %1381 = vset.pattern.permute.xlu1 %v1561_v18  ;;  %1382 = vset.pattern.permute.xlu2 %v1561_v18 }
  0x76   :  { %452 = vperm.xlu1 %1381, %v1635_v0   ;;  %456 = vperm.xlu2 %1382, %v1650_v4  }
  0x7b   :  { %v106_v20 = vpop.permute.xlu1 %105  ;;  %v1691_v21 = vpop.permute.xlu0 %92 }
  0x7c   :  { %v113_v60 = vadd.f32 %v106_v20, %v102_v29 }
  0x7d   :  { %v1701_v30 = vpop.permute.xlu2 %178 }
  0x7e   :  { %1385 = vset.pattern.permute.xlu1 %v1556_v13  ;;  %v131_v13 = vadd.f32 %v125_v19, %v122_v35  ;;  %v115_v14 = vmax.f32 %v113_v60, 0.0 }
  0x83   :  { %v111_v23 = vpop.permute.xlu1 %110  ;;  %v98_v24 = vpop.permute.xlu0 %97 }
  0x84   :  { %v114_v33 = vadd.f32 %v111_v23, %v102_v29  ;;  %v101_v49 = vadd.f32 %v98_v24, %v89_v42  ;;  %v1740_v23 = vstv %s1293_s18  ;;  %v1745_v24 = vld [vmem:[%s2273_s3 + $0x8] sm:$0xff]  ;;  %v100_v29 = vadd.f32 %v1691_v21, %v89_v42 }
  0x85   :  { %v185_v21 = vadd.f32 %v1701_v30, %v176_v50  ;;  %v66_v30 = vld [vmem:[%s2276_s6] sm:$0x3] }
  0x86   :  { %v116_v36 = vmax.f32 %v114_v33, 0.0  ;;  %vm68_vm2 = vnez %v66_v30 }
  0x87   :  { %v201_v46 = vpop.permute.xlu2 %200 }
  0x88   :  { %v119_v43 = vmul.f32 %v1715_v41, %v116_v36  ;;  %v204_v63 = vadd.f32 %v201_v46, %v194_v54  ;;  %v365_v36 = vperm.slane %v1745_v24, 0 }
  0x8a   :  { %v121_v53 = vadd.f32 %v119_v43, %v101_v49  ;;  %v206_v17 = vmax.f32 %v204_v63, 0.0  ;;  %v230_v43 = vperm.slane %v1698_v28, 7 }
  0x8c   :  { %v147_v26 = vpop.permute.xlu1 %146  ;;  %v139_v62 = vadd.f32 %v137_v57, %v121_v53 }
  0x8d   :  { %v183_v27 = vpop.permute.xlu0 %182  ;;  %v150_v40 = vadd.f32 %v147_v26, %v140_v34  ;;  %v133_v26 = vmax.f32 %v131_v13, 0.0 }
  0x8e   :  { %v186_v59 = vadd.f32 %v183_v27, %v176_v50  ;;  %v118_v27 = vmul.f32 %v1715_v41, %v115_v14  ;;  %v187_v50 = vmax.f32 %v185_v21, 0.0 }
  0x8f   :  { %v152_v51 = vmax.f32 %v150_v40, 0.0  ;;  %v167_v40 = vadd.f32 %v1693_v25, %v158_v39  ;;  %v136_v46 = vmul.f32 %v1725_v56, %v133_v26 }
  0x90   :  { %v188_v10 = vmax.f32 %v186_v59, 0.0  ;;  %v219_v16 = vpop.permute.xlu2 %218  ;;  %v120_v48 = vadd.f32 %v118_v27, %v100_v29  ;;  %v1764_v59 = vstv %s1295_s24 }
  0x91   :  { %v155_v58 = vmul.f32 %v1722_v52, %v152_v51  ;;  %v222_v18 = vadd.f32 %v219_v16, %v212_v2 }
  0x92   :  { %v191_v19 = vmul.f32 %v1735_v15, %v188_v10 }
  0x93   :  { %v157_v9 = vadd.f32 %v155_v58, %v139_v62  ;;  %v224_v33 = vmax.f32 %v222_v18, 0.0  ;;  %v169_v58 = vmax.f32 %v167_v40, 0.0  ;;  %v354_v62 = vperm.slane %v1710_v37, 1 }
  0x95   :  { %v227_v49 = vmul.f32 %v1752_v38, %v224_v33 }
  0x96   :  { %v165_v31 = vpop.permute.xlu1 %164  ;;  %v1703_v32 = vpop.permute.xlu0 %232 }
  0x97   :  { %v168_v44 = vadd.f32 %v165_v31, %v158_v39  ;;  %v209_v31 = vmul.f32 %v1740_v23, %v206_v17  ;;  %v172_v17 = vmul.f32 %v1729_v61, %v169_v58 }
  0x99   :  { %v170_v55 = vmax.f32 %v168_v44, 0.0  ;;  %v249_v44 = vsel %vm69_vm0, 16843009, %v1548_v3 }
  0x9a   :  { %v251_v39 = vunpack.c.0.s8 %v249_v44 }
  0x9b   :  { %v173_v8 = vmul.f32 %v1729_v61, %v170_v55 }
  0x9c   :  { %vm1773_vm1 = vcmp.ne.s32.totalorder %v251_v39, 0 }
  0x9d   :  { %v175_v20 = vadd.f32 %v173_v8, %v157_v9  ;;  %v138_v8 = vadd.f32 %v136_v46, %v120_v48 }
  0x9f   :  { %v1719_v45 = vpop.permute.xlu1 %196  ;;  %v193_v35 = vadd.f32 %v191_v19, %v175_v20  ;;  %v190_v20 = vmul.f32 %v1735_v15, %v187_v50  ;;  %v248_v19 = vsel %vm68_vm2, 16843009, %v1548_v3 }
  0xa0   :  { %v372_v47 = vpop.permute.xlu0 %371  ;;  %v250_v44 = vunpack.c.0.s8 %v248_v19 }
  0xa1   :  { %v375_v51 = vadd.f32 %v372_v47, %v365_v36  ;;  %v211_v57 = vadd.f32 %v209_v31, %v193_v35  ;;  %v203_v47 = vadd.f32 %v1719_v45, %v194_v54  ;;  %v239_v45 = vadd.f32 %v1703_v32, %v230_v43 }
  0xa2   :  { %vm1795_vm4 = vcmp.ne.s32.totalorder %v250_v44, 0 }
  0xa3   :  { %v377_v9 = vmax.f32 %v375_v51, 0.0  ;;  %v205_v54 = vmax.f32 %v203_v47, 0.0  ;;  %v241_v31 = vmax.f32 %v239_v45, 0.0  ;;  %v1564_v47 = vmov 0.0  }
  0xa4   :  { %55 = vst.msk [vmem:[#allocation3] sm:$0xff] %vm46_vm5, %v1564_v47 }
  0xa5   :  { %v379_v22 = vmul.f32 %v377_v9, %v1715_v41  ;;  %v208_v33 = vmul.f32 %v1740_v23, %v205_v54  ;;  %v244_v21 = vmul.f32 %v1764_v59, %v241_v31  ;;  %56 = vst.msk [vmem:[#allocation3 + $0x8] sm:$0xff] %vm46_vm5, %v1564_v47  ;;  %v450_v31 = vperm.slane %v1745_v24, 5 }
  0xa6   :  { %57 = vst.msk [vmem:[#allocation3 + $0x10] sm:$0xff] %vm46_vm5, %v1564_v47 }
  0xa7   :  { %58 = vst.msk [vmem:[#allocation3 + $0x18] sm:$0xff] %vm46_vm5, %v1564_v47 }
  0xa8   :  { %59 = vst.msk [vmem:[#allocation3 + $0x20] sm:$0xff] %vm46_vm5, %v1564_v47 }
  0xa9   :  { %v215_v11 = vpop.permute.xlu1 %214  ;;  %v1733_v12 = vpop.permute.xlu0 %469  ;;  %60 = vst.msk [vmem:[#allocation3 + $0x28] sm:$0xff] %vm46_vm5, %v1564_v47 }
  0xaa   :  { %v221_v10 = vadd.f32 %v215_v11, %v212_v2  ;;  %61 = vst.msk [vmem:[#allocation3 + $0x30] sm:$0xff] %vm46_vm5, %v1564_v47 }
  0xab   :  { %62 = vst.msk [vmem:[#allocation3 + $0x38] sm:$0xff] %vm46_vm5, %v1564_v47  ;;  %v289_v14 = vld [vmem:[#allocation3] sm:$0xff] }
  0xac   :  { %v223_v26 = vmax.f32 %v221_v10, 0.0  ;;  %v382_v10 = vperm.slane %v1745_v24, 1  ;;  %65 = vst.msk [vmem:[#allocation4 + $0x8] sm:$0xff] %vm63_vm6, %v1564_v47 }
  0xad   :  { %64 = vst.msk [vmem:[#allocation4] sm:$0xff] %vm63_vm6, %v1564_v47 }
  0xae   :  { %v226_v46 = vmul.f32 %v1752_v38, %v223_v26 }
  0xb2   :  { %v237_v42 = vpop.permute.xlu1 %236 }
  0xb3   :  { %v240_v53 = vadd.f32 %v237_v42, %v230_v43  ;;  %v143_v55 = vpop.permute.xlu0 %142  ;;  %v1562_v43 = vmov 15  }
  0xb4   :  { %v149_v25 = vadd.f32 %v143_v55, %v140_v34  ;;  %v229_v34 = vadd.f32 %v227_v49, %v211_v57  ;;  %1386 = vset.pattern.permute.xlu2 %v1562_v43  ;;  %v357_v57 = vpop.permute.xlu2 %356 }
  0xb5   :  { %v242_v60 = vmax.f32 %v240_v53, 0.0 }
  0xb6   :  { %v151_v63 = vmax.f32 %v149_v25, 0.0 }
  0xb7   :  { %v245_v28 = vmul.f32 %v1764_v59, %v242_v60  ;;  %v1563_v60 = vmov -1e+30  }
  0xb8   :  { %v154_v13 = vmul.f32 %v1722_v52, %v151_v63  ;;  %48 = vst.msk [vmem:[#allocation2 + $0x8] sm:$0xff] %vm46_vm5, %v1563_v60 }
  0xb9   :  { %v247_v16 = vadd.f32 %v245_v28, %v229_v34  ;;  %47 = vst.msk [vmem:[#allocation2] sm:$0xff] %vm46_vm5, %v1563_v60 }
  0xba   :  { %v156_v18 = vadd.f32 %v154_v13, %v138_v8  ;;  %49 = vst.msk [vmem:[#allocation2 + $0x10] sm:$0xff] %vm46_vm5, %v1563_v60 }
  0xbb   :  { %v361_v2 = vpop.permute.xlu1 %360  ;;  %v1783_v11 = vsel %vm1773_vm1, %v247_v16, -1e+30  ;;  %50 = vst.msk [vmem:[#allocation2 + $0x18] sm:$0xff] %vm46_vm5, %v1563_v60 }
  0xbc   :  { %v174_v27 = vadd.f32 %v172_v17, %v156_v18  ;;  %v364_v29 = vadd.f32 %v361_v2, %v354_v62  ;;  %v262_v32 = vsel %vm258_vm3, %v1783_v11, -inf  ;;  %v368_v39 = vpop.permute.xlu2 %367  ;;  %51 = vst.msk [vmem:[#allocation2 + $0x20] sm:$0xff] %vm46_vm5, %v1563_v60  ;;  %v399_v17 = vperm.slane %v1745_v24, 2 }
  0xbd   :  { %263 = vmax.xlane.f32.xlu1 %v262_v32  ;;  %52 = vst.msk [vmem:[#allocation2 + $0x28] sm:$0xff] %vm46_vm5, %v1563_v60  ;;  %v374_v34 = vadd.f32 %v368_v39, %v365_v36  ;;  %v363_v2 = vadd.f32 %v357_v57, %v354_v62 }
  0xbe   :  { %v192_v35 = vadd.f32 %v190_v20, %v174_v27  ;;  %v1791_v40 = vadd.f32 %v379_v22, %v364_v29  ;;  %53 = vst.msk [vmem:[#allocation2 + $0x30] sm:$0xff] %vm46_vm5, %v1563_v60  ;;  %v416_v20 = vperm.slane %v1745_v24, 3  ;;  %v433_v27 = vperm.slane %v1745_v24, 4 }
  0xbf   :  { %54 = vst.msk [vmem:[#allocation2 + $0x38] sm:$0xff] %vm46_vm5, %v1563_v60  ;;  %v1836_v13 = vld [vmem:[#allocation2 + $0x8] sm:$0xff]  ;;  %v376_v16 = vmax.f32 %v374_v34, 0.0 }
  0xc0   :  { %v210_v48 = vadd.f32 %v208_v33, %v192_v35  ;;  %v1565_v35 = vmov 16  }
  0xc1   :  { %v378_v36 = vmul.f32 %v376_v16, %v1715_v41 }
  0xc2   :  { %v228_v42 = vadd.f32 %v226_v46, %v210_v48  ;;  %v1853_v48 = vld [vmem:[#allocation2] sm:$0xff] }
  0xc4   :  { %v246_v51 = vadd.f32 %v244_v21, %v228_v42  ;;  %v385_v25 = vpop.permute.xlu1 %384  ;;  %v389_v30 = vpop.permute.xlu2 %388  ;;  %v467_v21 = vperm.slane %v1745_v24, 6 }
  0xc5   :  { %v391_v45 = vadd.f32 %v385_v25, %v382_v10 }
  0xc6   :  { %v1801_v53 = vsel %vm1795_vm4, %v246_v51, -1e+30 }
  0xc7   :  { %v259_v55 = vsel %vm258_vm3, %v1801_v53, -inf  ;;  %v393_v26 = vmax.f32 %v391_v45, 0.0 }
  0xc8   :  { %260 = vmax.xlane.f32.xlu2 %v259_v55  ;;  %v392_v55 = vadd.f32 %v389_v30, %v382_v10  ;;  %v484_v10 = vperm.slane %v1745_v24, 7 }
  0xc9   :  { %v395_v62 = vmul.f32 %v393_v26, %v1725_v56 }
  0xca   :  { %v394_v34 = vmax.f32 %v392_v55, 0.0 }
  0xcc   :  { %v406_v50 = vpop.permute.xlu2 %405 }
  0xcd   :  { %v402_v58 = vpop.permute.xlu1 %401  ;;  %v409_v16 = vadd.f32 %v406_v50, %v399_v17 }
  0xce   :  { %v408_v22 = vadd.f32 %v402_v58, %v399_v17 }
  0xd0   :  { %v410_v32 = vmax.f32 %v408_v22, 0.0 }
  0xd2   :  { %v412_v42 = vmul.f32 %v410_v32, %v1722_v52 }
  0xd4   :  { %v423_v8 = vpop.permute.xlu2 %422 }
  0xd6   :  { %473 = vperm.xlu1 %1385, %v1650_v4  }
  0xdc   :  { %v440_v28 = vpop.permute.xlu2 %439 }
  0xdd   :  { %v443_v17 = vadd.f32 %v440_v28, %v433_v27 }
  0xde   :  { %1387 = vset.pattern.permute.xlu1 %v1562_v43  ;;  %v380_v43 = vadd.f32 %v378_v36, %v363_v2  ;;  %v396_v2 = vmul.f32 %v394_v34, %v1725_v56  ;;  %v411_v36 = vmax.f32 %v409_v16, 0.0 }
  0xdf   :  { %490 = vperm.xlu1 %1387, %v1650_v4  }
  0xe0   :  { %486 = vperm.xlu2 %1386, %v1635_v0   ;;  %v397_v25 = vadd.f32 %v395_v62, %v380_v43  ;;  %v413_v24 = vmul.f32 %v411_v36, %v1722_v52  ;;  %v398_v62 = vadd.f32 %v396_v2, %v1791_v40 }
  0xe4   :  { %v457_v19 = vpop.permute.xlu2 %456 }
  0xe7   :  { %1395 = vset.pattern.permute.xlu1 %v1565_v35 }
  0xe8   :  { %1393 = vset.pattern.permute.xlu2 %v1550_v7  ;;  %v419_v7 = vpop.permute.xlu1 %418  ;;  %634 = vperm.xlu1 %1395, %v1650_v4  }
  0xe9   :  { %v425_v29 = vadd.f32 %v419_v7, %v416_v20  ;;  %v476_v7 = vadd.f32 %v1733_v12, %v467_v21 }
  0xeb   :  { %v427_v44 = vmax.f32 %v425_v29, 0.0  ;;  %v478_v22 = vmax.f32 %v476_v7, 0.0  ;;  %v426_v29 = vadd.f32 %v423_v8, %v416_v20  ;;  %v415_v8 = vadd.f32 %v413_v24, %v398_v62 }
  0xec   :  { %v1573_v24 = vmov 27   ;;  %v1575_v62 = vmov 28  }
  0xed   :  { %v429_v39 = vmul.f32 %v427_v44, %v1729_v61  ;;  %v480_v50 = vmul.f32 %v478_v22, %v1752_v38  ;;  %v428_v44 = vmax.f32 %v426_v29, 0.0  ;;  %v1568_v29 = vmov 20  }
  0xef   :  { %v430_v20 = vmul.f32 %v428_v44, %v1729_v61  ;;  %v1577_v44 = vmov 22  }
  0xf0   :  { %v436_v63 = vpop.permute.xlu1 %435 }
  0xf1   :  { %v442_v33 = vadd.f32 %v436_v63, %v433_v27  ;;  %v414_v63 = vadd.f32 %v412_v42, %v397_v25  ;;  %v432_v7 = vadd.f32 %v430_v20, %v415_v8  ;;  %v1957_v20 = vld [vmem:[#allocation2 + $0x18] sm:$0xff] }
  0xf3   :  { %v444_v51 = vmax.f32 %v442_v33, 0.0  ;;  %v431_v45 = vadd.f32 %v429_v39, %v414_v63 }
  0xf8   :  { %v453_v9 = vpop.permute.xlu1 %452 }
  0xf9   :  { %v459_v46 = vadd.f32 %v453_v9, %v450_v31  ;;  %v446_v9 = vmul.f32 %v444_v51, %v1735_v15 }
  0xfb   :  { %v461_v58 = vmax.f32 %v459_v46, 0.0  ;;  %v448_v12 = vadd.f32 %v446_v9, %v431_v45  ;;  %v460_v46 = vadd.f32 %v457_v19, %v450_v31  ;;  %v1885_v31 = vld [vmem:[%s2275_s5 + $0x8] sm:$0xff]  ;;  %v1893_v9 = vld [vmem:[%s2275_s5] sm:$0xff]  ;;  %s1571_s5 = smov 120  }
  0xfc   :  { %326 = vmatpush.msra.mxu0 %v1885_v31 }
  0xfd   :  { %v463_v30 = vmul.f32 %v461_v58, %v1740_v23  ;;  %v462_v58 = vmax.f32 %v460_v46, 0.0  ;;  %v1578_v46 = vmov 23  }
  0xfe   :  { %327 = vmatpush.msra.mxu0 %v1893_v9 }
  0xff   :  { %v465_v32 = vadd.f32 %v463_v30, %v448_v12  ;;  %v464_v63 = vmul.f32 %v462_v58, %v1740_v23  ;;  %v1962_v58 = vld [vmem:[%s2273_s3 + $0x10] sm:$0xff] }
 0x101   :  { %v482_v55 = vadd.f32 %v480_v50, %v465_v32  ;;  %v1569_v50 = vmov 24  }
 0x130   :  { %v264_v54 = vpop.xlane.xlu1 %263 }
 0x131   :  { %v1840_v18 = vmax.f32 %v1836_v13, %v264_v54  ;;  %v1566_v54 = vmov 17  }
 0x132   :  { %1397 = vset.pattern.permute.xlu1 %v1566_v54 }
 0x133   :  { %305 = vst.msk [vmem:[#allocation2 + $0x8] sm:$0xff] %vm46_vm5, %v1840_v18  ;;  %651 = vperm.xlu1 %1397, %v1650_v4   ;;  %v268_v8 = vsub.f32 %v1836_v13, %v1840_v18 }
 0x13b   :  { %v261_v57 = vpop.xlane.xlu2 %260 }
 0x13c   :  { %v1859_v60 = vmax.f32 %v1853_v48, %v261_v57  ;;  %v445_v57 = vmax.f32 %v443_v17, 0.0  ;;  %v1388_v17 = vpack.i.bf16 %v1885_v31, %v1893_v9 }
 0x13e   :  { %304 = vst.msk [vmem:[#allocation2] sm:$0xff] %vm46_vm5, %v1859_v60  ;;  %v447_v19 = vmul.f32 %v445_v57, %v1735_v15 }
 0x140   :  { %v449_v16 = vadd.f32 %v447_v19, %v432_v7  ;;  %v617_v7 = vperm.slane %v1710_v37, 2 }
 0x142   :  { %v466_v22 = vadd.f32 %v464_v63, %v449_v16 }
 0x143   :  { %v487_v26 = vpop.permute.xlu2 %486 }
 0x144   :  { %v493_v33 = vadd.f32 %v487_v26, %v484_v10 }
 0x146   :  { %v495_v43 = vmax.f32 %v493_v33, 0.0 }
 0x148   :  { %v497_v42 = vmul.f32 %v495_v43, %v1764_v59  ;;  %v474_v51 = vpop.permute.xlu1 %473  ;;  %v1572_v43 = vmov 26  }
 0x149   :  { %v477_v25 = vadd.f32 %v474_v51, %v467_v21  ;;  %v1567_v21 = vmov 19   ;;  %v1580_v51 = vmov 31  }
 0x14a   :  { %v499_v39 = vadd.f32 %v497_v42, %v482_v55  ;;  %1400 = vset.pattern.permute.xlu1 %v1567_v21  ;;  %v1579_v42 = vmov 29  }
 0x14b   :  { %v479_v27 = vmax.f32 %v477_v25, 0.0  ;;  %681 = vperm.xlu1 %1400, %v1635_v0  }
 0x14c   :  { %v1877_v28 = vsel %vm1795_vm4, %v499_v39, -1e+30 }
 0x14d   :  { %v506_v40 = vsel %vm258_vm3, %v1877_v28, -inf  ;;  %v481_v45 = vmul.f32 %v479_v27, %v1752_v38 }
 0x14e   :  { %507 = vmax.xlane.f32.xlu2 %v506_v40  ;;  %v271_v40 = vmul.f32 1.442695, %v268_v8 }
 0x14f   :  { %v483_v2 = vadd.f32 %v481_v45, %v466_v22 }
 0x150   :  { %1442 = vpow2.f32 %v271_v40 }
 0x151   :  { %v491_v34 = vpop.permute.xlu1 %490 }
 0x152   :  { %v494_v30 = vadd.f32 %v491_v34, %v484_v10  ;;  %v1570_v10 = vmov 25  }
 0x153   :  { %1402 = vset.pattern.permute.xlu1 %v1568_v29 }
 0x154   :  { %v496_v12 = vmax.f32 %v494_v30, 0.0  ;;  %698 = vperm.xlu1 %1402, %v1635_v0   ;;  %v645_v30 = vperm.slane %v1962_v58, 1 }
 0x156   :  { %v498_v36 = vmul.f32 %v496_v12, %v1764_v59  ;;  %v1977_v22 = vpop.eup %1442 }
 0x158   :  { %v500_v26 = vadd.f32 %v498_v36, %v483_v2 }
 0x15a   :  { %v1901_v32 = vsel %vm1773_vm1, %v500_v26, -1e+30  ;;  %v635_v2 = vpop.permute.xlu1 %634 }
 0x15b   :  { %v509_v33 = vsel %vm258_vm3, %v1901_v32, -inf }
 0x15c   :  { %510 = vmax.xlane.f32.xlu0 %v509_v33  ;;  %1405 = vset.pattern.permute.xlu1 %v1569_v50 }
 0x15d   :  { %891 = vperm.xlu1 %1405, %v1635_v0  }
 0x165   :  { %1407 = vset.pattern.permute.xlu1 %v1570_v10 }
 0x166   :  { %619 = vperm.xlu2 %1393, %v1640_v1   ;;  %908 = vperm.xlu1 %1407, %v1635_v0  }
 0x16e   :  { %1394 = vset.pattern.permute.xlu2 %v1565_v35  ;;  %1410 = vset.pattern.permute.xlu1 %v1572_v43  ;;  %v1574_v35 = vmov 18  }
 0x16f   :  { %630 = vperm.xlu2 %1394, %v1635_v0   ;;  %925 = vperm.xlu1 %1410, %v1635_v0  }
 0x170   :  { %1389 = vrot.lane.b32.xlu0 %v1388_v17, %s1571_s5 }
 0x177   :  { %1396 = vset.pattern.permute.xlu2 %v1566_v54  ;;  %1412 = vset.pattern.permute.xlu1 %v1573_v24  ;;  %v1576_v54 = vmov 21  }
 0x178   :  { %647 = vperm.xlu2 %1396, %v1635_v0   ;;  %623 = vperm.xlu0 %1384, %v1655_v5  }
 0x179   :  { %942 = vperm.xlu1 %1412, %v1635_v0  }
 0x180   :  { %1399 = vset.pattern.permute.xlu2 %v1574_v35  ;;  %1398 = vset.pattern.permute.xlu0 %v1574_v35 }
 0x181   :  { %668 = vperm.xlu2 %1399, %v1650_v4   ;;  %664 = vperm.xlu0 %1398, %v1635_v0  }
 0x182   :  { %1415 = vset.pattern.permute.xlu1 %v1575_v62 }
 0x183   :  { %959 = vperm.xlu1 %1415, %v1635_v0  }
 0x189   :  { %1401 = vset.pattern.permute.xlu2 %v1567_v21  ;;  %1403 = vset.pattern.permute.xlu0 %v1576_v54  ;;  %v1581_v21 = vmov 30  }
 0x18a   :  { %685 = vperm.xlu2 %1401, %v1650_v4   ;;  %715 = vperm.xlu0 %1403, %v1635_v0  }
 0x18b   :  { %1417 = vset.pattern.permute.xlu1 %v1548_v3 }
 0x192   :  { %1404 = vset.pattern.permute.xlu2 %v1577_v44  ;;  %1408 = vset.pattern.permute.xlu0 %v1568_v29 }
 0x193   :  { %732 = vperm.xlu2 %1404, %v1635_v0   ;;  %702 = vperm.xlu0 %1408, %v1650_v4  }
 0x19b   :  { %1406 = vset.pattern.permute.xlu2 %v1578_v46  ;;  %1413 = vset.pattern.permute.xlu0 %v1577_v44 }
 0x19c   :  { %749 = vperm.xlu2 %1406, %v1635_v0   ;;  %736 = vperm.xlu0 %1413, %v1650_v4  }
 0x1a4   :  { %1409 = vset.pattern.permute.xlu2 %v1549_v6  ;;  %1419 = vset.pattern.permute.xlu0 %v1579_v42 }
 0x1a5   :  { %880 = vperm.xlu2 %1409, %v1640_v1   ;;  %976 = vperm.xlu0 %1419, %v1635_v0   ;;  %v1942_v1 = vld [vmem:[#allocation2 + $0x10] sm:$0xff]  ;;  %v652_v17 = vpop.permute.xlu1 %651 }
 0x1ad   :  { %1411 = vset.pattern.permute.xlu2 %v1576_v54  ;;  %1424 = vset.pattern.permute.xlu0 %v1580_v51 }
 0x1ae   :  { %719 = vperm.xlu2 %1411, %v1650_v4   ;;  %1010 = vperm.xlu0 %1424, %v1635_v0  }
 0x1b6   :  { %1414 = vset.pattern.permute.xlu2 %v1569_v50  ;;  %1425 = vset.pattern.permute.xlu0 %v1548_v3 }
 0x1b7   :  { %895 = vperm.xlu2 %1414, %v1650_v4   ;;  %275 = vperm.xlu0 %1425, %v1859_v60  }
 0x1bf   :  { %1416 = vset.pattern.permute.xlu2 %v1578_v46  ;;  %280 = vperm.xlu0 %1425, %v1840_v18  }
 0x1c0   :  { %753 = vperm.xlu2 %1416, %v1650_v4  }
 0x1c1   :  { %v508_v55 = vpop.xlane.xlu2 %507 }
 0x1c2   :  { %v1946_v57 = vmax.f32 %v1942_v1, %v508_v55 }
 0x1c4   :  { %551 = vst.msk [vmem:[#allocation2 + $0x10] sm:$0xff] %vm46_vm5, %v1946_v57  ;;  %522 = vperm.xlu1 %1417, %v1946_v57  }
 0x1c8   :  { %1420 = vset.pattern.permute.xlu2 %v1549_v6  ;;  %v628_v6 = vperm.slane %v1962_v58, 0 }
 0x1c9   :  { %884 = vperm.xlu2 %1420, %v1655_v5   ;;  %v620_v39 = vpop.permute.xlu2 %619 }
 0x1ca   :  { %v626_v63 = vadd.f32 %v620_v39, %v617_v7 }
 0x1cf   :  { %v511_v19 = vpop.xlane.xlu0 %510 }
 0x1d0   :  { %v1965_v27 = vmax.f32 %v1957_v20, %v511_v19  ;;  %v655_v19 = vadd.f32 %v652_v17, %v645_v30 }
 0x1d1   :  { %1422 = vset.pattern.permute.xlu2 %v1581_v21  ;;  %v631_v5 = vpop.permute.xlu2 %630 }
 0x1d2   :  { %v515_v13 = vsub.f32 %v1957_v20, %v1965_v27  ;;  %552 = vst.msk [vmem:[#allocation2 + $0x18] sm:$0xff] %vm46_vm5, %v1965_v27  ;;  %v637_v18 = vadd.f32 %v631_v5, %v628_v6  ;;  %993 = vperm.xlu2 %1422, %v1635_v0   ;;  %527 = vperm.xlu1 %1417, %v1965_v27  }
 0x1d3   :  { %v2282_v27 = vsub.f32 %v1942_v1, %v1946_v57 }
 0x1d4   :  { %v639_v34 = vmax.f32 %v637_v18, 0.0  ;;  %v662_v18 = vperm.slane %v1962_v58, 2  ;;  %v518_v49 = vmul.f32 1.442695, %v515_v13 }
 0x1d6   :  { %v641_v16 = vmul.f32 %v639_v34, %v1715_v41  ;;  %v657_v34 = vmax.f32 %v655_v19, 0.0 }
 0x1d8   :  { %v643_v45 = vadd.f32 %v641_v16, %v626_v63 }
 0x1d9   :  { %v648_v12 = vpop.permute.xlu2 %647 }
 0x1da   :  { %v654_v36 = vadd.f32 %v648_v12, %v645_v30  ;;  %344 = vperm.xlu1 %1417, %v1977_v22   ;;  %1426 = vset.pattern.permute.xlu2 %v1575_v62  ;;  %v682_v62 = vpop.permute.xlu1 %681  ;;  %v659_v12 = vmul.f32 %v657_v34, %v1725_v56 }
 0x1db   :  { %963 = vperm.xlu2 %1426, %v1650_v4  }
 0x1dc   :  { %v656_v0 = vmax.f32 %v654_v36, 0.0 }
 0x1de   :  { %v658_v26 = vmul.f32 %v656_v0, %v1725_v56 }
 0x1e0   :  { %v1983_v29 = vadd.f32 %v658_v26, %v643_v45  ;;  %v696_v26 = vperm.slane %v1962_v58, 4 }
 0x1e1   :  { %v669_v33 = vpop.permute.xlu2 %668 }
 0x1e2   :  { %v1390_v50 = vpop.permute.xlu0 %1389  ;;  %1418 = vset.pattern.permute.xlu1 %v1570_v10  ;;  %v1995_v10 = vpop.permute.xlu1 %698  ;;  %v672_v16 = vadd.f32 %v669_v33, %v662_v18  ;;  %v713_v33 = vperm.slane %v1962_v58, 5 }
 0x1e3   :  { %912 = vperm.xlu1 %1418, %v1650_v4   ;;  %1428 = vset.pattern.permute.xlu2 %v1581_v21  ;;  %v1392_v8 = vunpack.i.h.bf16 %v1390_v50 }
 0x1e4   :  { %997 = vperm.xlu2 %1428, %v1650_v4  }
 0x1e5   :  { %581 = vmatpush.msra.mxu1 %v1392_v8 }
 0x1e9   :  { %v686_v35 = vpop.permute.xlu2 %685 }
 0x1ea   :  { %v624_v54 = vpop.permute.xlu0 %623  ;;  %v892_v21 = vpop.permute.xlu1 %891 }
 0x1eb   :  { %1421 = vset.pattern.permute.xlu1 %v1572_v43  ;;  %v638_v43 = vadd.f32 %v635_v2, %v628_v6  ;;  %v679_v6 = vperm.slane %v1962_v58, 3  ;;  %v627_v45 = vadd.f32 %v624_v54, %v617_v7  ;;  %v674_v2 = vmax.f32 %v672_v16, 0.0 }
 0x1ec   :  { %929 = vperm.xlu1 %1421, %v1650_v4   ;;  %1430 = vset.pattern.permute.xlu2 %v1548_v3 }
 0x1ed   :  { %v640_v5 = vmax.f32 %v638_v43, 0.0  ;;  %v689_v36 = vadd.f32 %v686_v35, %v679_v6 }
 0x1ef   :  { %v691_v43 = vmax.f32 %v689_v36, 0.0 }
 0x1f1   :  { %v1991_v44 = vpop.permute.xlu2 %732  ;;  %v693_v35 = vmul.f32 %v691_v43, %v1729_v61  ;;  %v688_v43 = vadd.f32 %v682_v62, %v679_v6 }
 0x1f3   :  { %v665_v46 = vpop.permute.xlu0 %664 }
 0x1f4   :  { %1423 = vset.pattern.permute.xlu1 %v1573_v24  ;;  %v1391_v24 = vunpack.i.l.bf16 %v1390_v50  ;;  %v909_v50 = vpop.permute.xlu1 %908 }
 0x1f5   :  { %946 = vperm.xlu1 %1423, %v1650_v4  }
 0x1f6   :  { %582 = vmatpush.msra.mxu1 %v1391_v24 }
 0x1f9   :  { %v1997_v55 = vpop.permute.xlu2 %749 }
 0x1fc   :  { %v1999_v39 = vpop.permute.xlu0 %715 }
 0x1fd   :  { %1427 = vset.pattern.permute.xlu1 %v1579_v42  ;;  %v642_v42 = vmul.f32 %v640_v5, %v1715_v41 }
 0x1fe   :  { %980 = vperm.xlu1 %1427, %v1650_v4  }
 0x1ff   :  { %v644_v0 = vadd.f32 %v642_v42, %v627_v45  ;;  %v671_v45 = vadd.f32 %v665_v46, %v662_v18 }
 0x201   :  { %v2003_v40 = vpop.permute.xlu2 %880  ;;  %v661_v8 = vadd.f32 %v659_v12, %v644_v0  ;;  %v747_v0 = vperm.slane %v1962_v58, 7 }
 0x205   :  { %v703_v63 = vpop.permute.xlu0 %702 }
 0x206   :  { %1429 = vset.pattern.permute.xlu1 %v1580_v51  ;;  %v706_v17 = vadd.f32 %v703_v63, %v696_v26  ;;  %v676_v51 = vmul.f32 %v674_v2, %v1722_v52  ;;  %v2022_v63 = vld [vmem:[%s2273_s3 + $0x18] sm:$0xff]  ;;  %s1582_s3 = smov 112  }
 0x207   :  { %1014 = vperm.xlu1 %1429, %v1650_v4   ;;  %v730_v4 = vperm.slane %v1962_v58, 6  ;;  %v906_v18 = vperm.slane %v2022_v63, 1 }
 0x208   :  { %v708_v7 = vmax.f32 %v706_v17, 0.0  ;;  %v678_v5 = vadd.f32 %v676_v51, %v661_v8  ;;  %v673_v8 = vmax.f32 %v671_v45, 0.0  ;;  %v923_v45 = vperm.slane %v2022_v63, 2 }
 0x209   :  { %v720_v30 = vpop.permute.xlu2 %719 }
 0x20a   :  { %v723_v54 = vadd.f32 %v720_v30, %v713_v33  ;;  %v710_v42 = vmul.f32 %v708_v7, %v1735_v15  ;;  %v695_v12 = vadd.f32 %v693_v35, %v678_v5  ;;  %v889_v30 = vperm.slane %v2022_v63, 0 }
 0x20b   :  { %v690_v5 = vmax.f32 %v688_v43, 0.0  ;;  %v675_v58 = vmul.f32 %v673_v8, %v1722_v52 }
 0x20c   :  { %v725_v16 = vmax.f32 %v723_v54, 0.0  ;;  %v712_v17 = vadd.f32 %v710_v42, %v695_v12  ;;  %v898_v46 = vadd.f32 %v892_v21, %v889_v30 }
 0x20e   :  { %v737_v19 = vpop.permute.xlu0 %736  ;;  %v727_v51 = vmul.f32 %v725_v16, %v1740_v23  ;;  %v900_v6 = vmax.f32 %v898_v46, 0.0  ;;  %v915_v16 = vadd.f32 %v909_v50, %v906_v18  ;;  %v739_v46 = vadd.f32 %v1991_v44, %v730_v4 }
 0x20f   :  { %1431 = vset.pattern.permute.xlu1 %v1548_v3  ;;  %v740_v34 = vadd.f32 %v737_v19, %v730_v4  ;;  %v926_v3 = vpop.permute.xlu1 %925 }
 0x210   :  { %v729_v54 = vadd.f32 %v727_v51, %v712_v17  ;;  %v692_v51 = vmul.f32 %v690_v5, %v1729_v61  ;;  %v902_v50 = vmul.f32 %v900_v6, %v1715_v41  ;;  %v917_v8 = vmax.f32 %v915_v16, 0.0 }
 0x211   :  { %v2016_v24 = vpop.permute.xlu2 %895  ;;  %v742_v2 = vmax.f32 %v740_v34, 0.0  ;;  %v705_v34 = vadd.f32 %v1995_v10, %v696_v26  ;;  %v677_v26 = vadd.f32 %v675_v58, %v1983_v29  ;;  %v957_v58 = vperm.slane %v2022_v63, 4 }
 0x212   :  { %v919_v44 = vmul.f32 %v917_v8, %v1725_v56 }
 0x213   :  { %v744_v25 = vmul.f32 %v742_v2, %v1752_v38  ;;  %v878_v2 = vperm.slane %v1710_v37, 3  ;;  %v707_v10 = vmax.f32 %v705_v34, 0.0 }
 0x215   :  { %v746_v42 = vadd.f32 %v744_v25, %v729_v54  ;;  %v722_v25 = vadd.f32 %v1999_v39, %v713_v33  ;;  %v887_v29 = vadd.f32 %v2003_v40, %v878_v2  ;;  %v940_v39 = vperm.slane %v2022_v63, 3 }
 0x216   :  { %v709_v33 = vmul.f32 %v707_v10, %v1735_v15  ;;  %v694_v54 = vadd.f32 %v692_v51, %v677_v26 }
 0x217   :  { %v2025_v36 = vpop.permute.xlu0 %976  ;;  %v943_v12 = vpop.permute.xlu1 %942  ;;  %v904_v34 = vadd.f32 %v902_v50, %v887_v29 }
 0x218   :  { %v949_v40 = vadd.f32 %v943_v12, %v940_v39  ;;  %v711_v6 = vadd.f32 %v709_v33, %v694_v54  ;;  %v974_v12 = vperm.slane %v2022_v63, 5 }
 0x219   :  { %v921_v26 = vadd.f32 %v919_v44, %v904_v34 }
 0x21a   :  { %v754_v19 = vpop.permute.xlu2 %753  ;;  %v983_v33 = vadd.f32 %v2025_v36, %v974_v12 }
 0x21b   :  { %v757_v7 = vadd.f32 %v754_v19, %v747_v0  ;;  %v932_v19 = vadd.f32 %v926_v3, %v923_v45  ;;  %v741_v3 = vmax.f32 %v739_v46, 0.0 }
 0x21d   :  { %v759_v35 = vmax.f32 %v757_v7, 0.0  ;;  %v934_v4 = vmax.f32 %v932_v19, 0.0  ;;  %v743_v8 = vmul.f32 %v741_v3, %v1752_v38  ;;  %v1008_v3 = vperm.slane %v2022_v63, 7 }
 0x21f   :  { %v761_v62 = vmul.f32 %v759_v35, %v1764_v59  ;;  %v724_v35 = vmax.f32 %v722_v25, 0.0  ;;  %v936_v47 = vmul.f32 %v934_v4, %v1722_v52  ;;  %v951_v25 = vmax.f32 %v949_v40, 0.0 }
 0x220   :  { %v2040_v21 = vpop.permute.xlu0 %1010 }
 0x221   :  { %v763_v17 = vadd.f32 %v761_v62, %v746_v42  ;;  %v756_v62 = vadd.f32 %v1997_v55, %v747_v0  ;;  %v726_v16 = vmul.f32 %v724_v35, %v1740_v23  ;;  %v991_v0 = vperm.slane %v2022_v63, 6 }
 0x222   :  { %v938_v46 = vadd.f32 %v936_v47, %v921_v26 }
 0x223   :  { %v2048_v43 = vsel %vm1773_vm1, %v763_v17, -1e+30  ;;  %v2061_v5 = vpop.permute.xlu2 %884  ;;  %v960_v17 = vpop.permute.xlu1 %959  ;;  %v758_v19 = vmax.f32 %v756_v62, 0.0  ;;  %v728_v55 = vadd.f32 %v726_v16, %v711_v6  ;;  %v985_v16 = vmax.f32 %v983_v33, 0.0 }
 0x224   :  { %v772_v7 = vsel %vm258_vm3, %v2048_v43, -inf  ;;  %v966_v50 = vadd.f32 %v960_v17, %v957_v58 }
 0x225   :  { %773 = vmax.xlane.f32.xlu2 %v772_v7  ;;  %v760_v35 = vmul.f32 %v758_v19, %v1764_v59  ;;  %v745_v4 = vadd.f32 %v743_v8, %v728_v55 }
 0x226   :  { %v968_v29 = vmax.f32 %v966_v50, 0.0 }
 0x228   :  { %v970_v6 = vmul.f32 %v968_v29, %v1735_v15 }
 0x229   :  { %v276_v42 = vpop.permute.xlu0 %275 }
 0x22a   :  { %v283_v51 = vsub.f32 %v1801_v53, %v276_v42  ;;  %v953_v53 = vmul.f32 %v951_v25, %v1729_v61  ;;  %v987_v25 = vmul.f32 %v985_v16, %v1740_v23 }
 0x22c   :  { %v285_v10 = vmul.f32 1.442695, %v283_v51  ;;  %v994_v7 = vpop.permute.xlu2 %993  ;;  %v955_v62 = vadd.f32 %v953_v53, %v938_v46  ;;  %v1017_v51 = vadd.f32 %v2040_v21, %v1008_v3 }
 0x22d   :  { %v1000_v34 = vadd.f32 %v994_v7, %v991_v0 }
 0x22e   :  { %1444 = vpow2.f32 %v285_v10  ;;  %v972_v26 = vadd.f32 %v970_v6, %v955_v62  ;;  %v1019_v19 = vmax.f32 %v1017_v51, 0.0  ;;  %v899_v51 = vadd.f32 %v2016_v24, %v889_v30 }
 0x22f   :  { %v1002_v47 = vmax.f32 %v1000_v34, 0.0 }
 0x230   :  { %v989_v46 = vadd.f32 %v987_v25, %v972_v26  ;;  %v1021_v53 = vmul.f32 %v1019_v19, %v1764_v59 }
 0x231   :  { %v281_v54 = vpop.permute.xlu0 %280  ;;  %v1004_v55 = vmul.f32 %v1002_v47, %v1752_v38 }
 0x232   :  { %v284_v44 = vsub.f32 %v1783_v11, %v281_v54  ;;  %v762_v11 = vadd.f32 %v760_v35, %v745_v4 }
 0x233   :  { %v1006_v29 = vadd.f32 %v1004_v55, %v989_v46 }
 0x234   :  { %v1445_v40 = vpop.eup %1444  ;;  %v287_v42 = vmul.f32 1.442695, %v284_v44  ;;  %v2097_v8 = vsel %vm1795_vm4, %v762_v11, -1e+30 }
 0x235   :  { %1296 = vmatmul.msk.f32.vlgmr.msra.gmra.mxu0 %vm258_vm3, %v1445_v40  ;;  %v293_v36 = vsel %vm258_vm3, %v1445_v40, 0.0  ;;  %v769_v21 = vsel %vm258_vm3, %v2097_v8, -inf  ;;  %v1023_v35 = vadd.f32 %v1021_v53, %v1006_v29  ;;  %v964_v20 = vpop.permute.xlu2 %963 }
 0x236   :  { %1446 = vpow2.f32 %v287_v42  ;;  %v523_v17 = vpop.permute.xlu1 %522  ;;  %294 = vadd.xlane.f32.xlu0 %v293_v36 }
 0x237   :  { %v530_v10 = vsub.f32 %v1877_v28, %v523_v17  ;;  %v2110_v40 = vsel %vm1795_vm4, %v1023_v35, -1e+30 }
 0x238   :  { %v1030_v42 = vsel %vm258_vm3, %v2110_v40, -inf }
 0x239   :  { %v532_v50 = vmul.f32 1.442695, %v530_v10 }
 0x23b   :  { %1448 = vpow2.f32 %v532_v50 }
 0x23c   :  { %v1447_v7 = vpop.eup %1446 }
 0x23d   :  { %1297 = vmatmul.msk.f32.gmra.mxu0 %vm258_vm3, %v1447_v7  ;;  %v296_v28 = vsel %vm258_vm3, %v1447_v7, 0.0 }
 0x23e   :  { %770 = vmax.xlane.f32.xlu0 %v769_v21  ;;  %297 = vadd.xlane.f32.xlu2 %v296_v28  ;;  %v998_v46 = vpop.permute.xlu2 %997 }
 0x241   :  { %v1449_v33 = vpop.eup %1448 }
 0x242   :  { %1298 = vmatmul.msk.f32.vlgmr.msra.gmra.mxu1 %vm258_vm3, %v1449_v33  ;;  %v541_v54 = vsel %vm258_vm3, %v1449_v33, 0.0 }
 0x243   :  { %542 = vadd.xlane.f32.xlu1 %v541_v54 }
 0x244   :  { %v528_v44 = vpop.permute.xlu1 %527 }
 0x245   :  { %v531_v4 = vsub.f32 %v1901_v32, %v528_v44  ;;  %v267_v32 = vsub.f32 %v1853_v48, %v1859_v60  ;;  %v516_v48 = vmul.f32 1.442695, %v2282_v27  ;;  %v901_v60 = vmax.f32 %v899_v51, 0.0  ;;  %v537_v27 = vld [vmem:[#allocation3 + $0x10] sm:$0xff] }
 0x247   :  { %v534_v34 = vmul.f32 1.442695, %v531_v4  ;;  %v269_v17 = vmul.f32 1.442695, %v267_v32  ;;  %v903_v30 = vmul.f32 %v901_v60, %v1715_v41 }
 0x249   :  { %1450 = vpow2.f32 %v534_v34 }
 0x24a   :  { %1452 = vpow2.f32 %v518_v49  ;;  %v2176_v49 = vld [vmem:[#allocation2 + $0x20] sm:$0xff] }
 0x24b   :  { %1031 = vmax.xlane.f32.xlu1 %v1030_v42  ;;  %1454 = vpow2.f32 %v269_v17 }
 0x24c   :  { %v2114_v62 = vpop.permute.xlu1 %344  ;;  %1456 = vpow2.f32 %v516_v48 }
 0x24f   :  { %v1451_v6 = vpop.eup %1450 }
 0x250   :  { %1299 = vmatmul.msk.f32.gmra.mxu1 %vm258_vm3, %v1451_v6  ;;  %v544_v16 = vsel %vm258_vm3, %v1451_v6, 0.0  ;;  %v2126_v47 = vpop.eup %1452 }
 0x251   :  { %545 = vadd.xlane.f32.xlu2 %v544_v16  ;;  %v1455_v25 = vpop.eup %1454 }
 0x255   :  { %v913_v36 = vpop.permute.xlu1 %912 }
 0x256   :  { %v916_v10 = vadd.f32 %v913_v36, %v906_v18  ;;  %v888_v18 = vadd.f32 %v2061_v5, %v878_v2  ;;  %v290_v36 = vld [vmem:[#allocation3 + $0x8] sm:$0xff] }
 0x257   :  { %v292_v32 = vmul.f32 %v1977_v22, %v290_v36  ;;  %v336_v22 = vld [vmem:[#allocation4 + $0x8] sm:$0xff] }
 0x258   :  { %v918_v50 = vmax.f32 %v916_v10, 0.0  ;;  %v905_v55 = vadd.f32 %v903_v30, %v888_v18  ;;  %v2190_v30 = vld [vmem:[#allocation2 + $0x30] sm:$0xff] }
 0x25a   :  { %v920_v57 = vmul.f32 %v918_v50, %v1725_v56  ;;  %v1001_v56 = vadd.f32 %v998_v46, %v991_v0 }
 0x25c   :  { %v922_v21 = vadd.f32 %v920_v57, %v905_v55  ;;  %v1003_v33 = vmax.f32 %v1001_v56, 0.0  ;;  %v538_v57 = vld [vmem:[#allocation3 + $0x18] sm:$0xff] }
 0x25e   :  { %v930_v11 = vpop.permute.xlu1 %929  ;;  %v1005_v44 = vmul.f32 %v1003_v33, %v1752_v38  ;;  %v2165_v38 = vld [vmem:[#allocation2 + $0x28] sm:$0xff] }
 0x25f   :  { %v933_v13 = vadd.f32 %v930_v11, %v923_v45  ;;  %v967_v45 = vadd.f32 %v964_v20, %v957_v58 }
 0x261   :  { %v935_v1 = vmax.f32 %v933_v13, 0.0  ;;  %v969_v41 = vmax.f32 %v967_v45, 0.0 }
 0x263   :  { %v937_v7 = vmul.f32 %v935_v1, %v1722_v52  ;;  %v971_v29 = vmul.f32 %v969_v41, %v1735_v15 }
 0x264   :  { %599 = vperm.xlu1 %1431, %v2126_v47  }
 0x265   :  { %v939_v2 = vadd.f32 %v937_v7, %v922_v21  ;;  %v335_v7 = vld [vmem:[#allocation4] sm:$0xff] }
 0x267   :  { %v947_v26 = vpop.permute.xlu1 %946 }
 0x268   :  { %v950_v24 = vadd.f32 %v947_v26, %v940_v39  ;;  %v1457_v39 = vpop.eup %1456 }
 0x269   :  { %339 = vperm.xlu2 %1430, %v1455_v25   ;;  %v539_v60 = vmul.f32 %v1457_v39, %v537_v27  ;;  %v801_v27 = vld [vmem:[#allocation3 + $0x28] sm:$0xff] }
 0x26a   :  { %v952_v19 = vmax.f32 %v950_v24, 0.0 }
 0x26c   :  { %v954_v28 = vmul.f32 %v952_v19, %v1729_v61 }
 0x26e   :  { %v956_v58 = vadd.f32 %v954_v28, %v939_v2  ;;  %v2204_v28 = vld [vmem:[#allocation2 + $0x38] sm:$0xff] }
 0x270   :  { %v981_v53 = vpop.permute.xlu1 %980  ;;  %v973_v54 = vadd.f32 %v971_v29, %v956_v58 }
 0x271   :  { %v984_v37 = vadd.f32 %v981_v53, %v974_v12  ;;  %594 = vperm.xlu2 %1430, %v1457_v39  }
 0x273   :  { %v986_v5 = vmax.f32 %v984_v37, 0.0 }
 0x275   :  { %v988_v52 = vmul.f32 %v986_v5, %v1740_v23  ;;  %v1432_v23 = vpack.i.bf16 %v1893_v9, %v1885_v31  ;;  %v291_v31 = vmul.f32 %v1455_v25, %v289_v14  ;;  %v348_v25 = vmul.f32 %v2114_v62, %v336_v22 }
 0x276   :  { %v540_v62 = vmul.f32 %v2126_v47, %v538_v57 }
 0x277   :  { %v990_v61 = vadd.f32 %v988_v52, %v973_v54 }
 0x279   :  { %v1015_v35 = vpop.permute.xlu1 %1014  ;;  %v1007_v34 = vadd.f32 %v1005_v44, %v990_v61 }
 0x27a   :  { %v1018_v12 = vadd.f32 %v1015_v35, %v1008_v3 }
 0x27c   :  { %v1020_v4 = vmax.f32 %v1018_v12, 0.0 }
 0x27e   :  { %v1022_v42 = vmul.f32 %v1020_v4, %v1764_v59 }
 0x280   :  { %v1024_v0 = vadd.f32 %v1022_v42, %v1007_v34 }
 0x282   :  { %v2159_v6 = vsel %vm1773_vm1, %v1024_v0, -1e+30 }
 0x283   :  { %v1033_v15 = vsel %vm258_vm3, %v2159_v6, -inf }
 0x284   :  { %1034 = vmax.xlane.f32.xlu0 %v1033_v15 }
 0x298   :  { %v774_v63 = vpop.xlane.xlu2 %773  ;;  %1433 = vrot.lane.b32.xlu0 %v1432_v23, %s1582_s3 }
 0x299   :  { %v2168_v3 = vmax.f32 %v2165_v38, %v774_v63 }
 0x29b   :  { %v778_v59 = vsub.f32 %v2165_v38, %v2168_v3  ;;  %815 = vst.msk [vmem:[#allocation2 + $0x28] sm:$0xff] %vm46_vm5, %v2168_v3  ;;  %790 = vperm.xlu1 %1431, %v2168_v3  }
 0x2a3   :  { %1438 = vrot.lane.b32.xlu1 %v1432_v23, %s1583_s10 }
 0x2a9   :  { %v295_v9 = vpop.xlane.xlu0 %294 }
 0x2aa   :  { %v299_v16 = vadd.f32 %v295_v9, %v291_v31 }
 0x2ac   :  { %302 = vst.msk [vmem:[#allocation3] sm:$0xff] %vm46_vm5, %v299_v16 }
 0x2b1   :  { %v298_v17 = vpop.xlane.xlu2 %297  ;;  %v771_v11 = vpop.xlane.xlu0 %770 }
 0x2b2   :  { %v300_v51 = vadd.f32 %v298_v17, %v292_v32  ;;  %v2180_v10 = vmax.f32 %v2176_v49, %v771_v11  ;;  %v329_v20 = vpop.f32.mrf.mxu0 }
 0x2b4   :  { %303 = vst.msk [vmem:[#allocation3 + $0x8] sm:$0xff] %vm46_vm5, %v300_v51  ;;  %v777_v48 = vsub.f32 %v2176_v49, %v2180_v10  ;;  %785 = vperm.xlu2 %1430, %v2180_v10  }
 0x2b5   :  { %814 = vst.msk [vmem:[#allocation2 + $0x20] sm:$0xff] %vm46_vm5, %v2180_v10 }
 0x2b6   :  { %v543_v13 = vpop.xlane.xlu1 %542  ;;  %v779_v31 = vmul.f32 1.442695, %v777_v48  ;;  %v800_v48 = vld [vmem:[#allocation3 + $0x20] sm:$0xff] }
 0x2b7   :  { %v547_v26 = vadd.f32 %v543_v13, %v539_v60 }
 0x2b9   :  { %549 = vst.msk [vmem:[#allocation3 + $0x10] sm:$0xff] %vm46_vm5, %v547_v26 }
 0x2ba   :  { %v332_v50 = vpop.f32.mrf.mxu0 }
 0x2bb   :  { %v350_v24 = vadd.f32 %v348_v25, %v332_v50  ;;  %v1143_v17 = vld [vmem:[#allocation3 + $0x8] sm:$0xff] }
 0x2bd   :  { %353 = vst.msk [vmem:[#allocation4 + $0x8] sm:$0xff] %vm351_vm7, %v350_v24 }
 0x2be   :  { %v1032_v18 = vpop.xlane.xlu1 %1031 }
 0x2bf   :  { %v2194_v1 = vmax.f32 %v2190_v30, %v1032_v18  ;;  %v584_v16 = vpop.f32.mrf.mxu1 }
 0x2c1   :  { %v1038_v19 = vsub.f32 %v2190_v30, %v2194_v1  ;;  %1075 = vst.msk [vmem:[#allocation2 + $0x30] sm:$0xff] %vm46_vm5, %v2194_v1  ;;  %1046 = vperm.xlu2 %1430, %v2194_v1  }
 0x2c3   :  { %v1040_v49 = vmul.f32 1.442695, %v1038_v19 }
 0x2c4   :  { %v546_v45 = vpop.xlane.xlu2 %545 }
 0x2c5   :  { %v548_v55 = vadd.f32 %v546_v45, %v540_v62 }
 0x2c7   :  { %550 = vst.msk [vmem:[#allocation3 + $0x18] sm:$0xff] %vm46_vm5, %v548_v55 }
 0x2cc   :  { %v340_v46 = vpop.permute.xlu2 %339 }
 0x2cd   :  { %v347_v39 = vmul.f32 %v340_v46, %v335_v7  ;;  %v587_v36 = vpop.f32.mrf.mxu1  ;;  %v1142_v7 = vld [vmem:[#allocation3] sm:$0xff] }
 0x2cf   :  { %v349_v21 = vadd.f32 %v347_v39, %v329_v20 }
 0x2d1   :  { %352 = vst.msk [vmem:[#allocation4] sm:$0xff] %vm351_vm7, %v349_v21 }
 0x2d4   :  { %v2216_v2 = vpop.permute.xlu2 %594 }
 0x2d6   :  { %v2214_v47 = vpop.permute.xlu1 %599 }
 0x2d8   :  { %v590_v21 = vld [vmem:[#allocation4] sm:$0xff] }
 0x2f7   :  { %v1035_v41 = vpop.xlane.xlu0 %1034 }
 0x2f8   :  { %v2207_v53 = vmax.f32 %v2204_v28, %v1035_v41 }
 0x2fa   :  { %v1039_v37 = vsub.f32 %v2204_v28, %v2207_v53  ;;  %1076 = vst.msk [vmem:[#allocation2 + $0x38] sm:$0xff] %vm46_vm5, %v2207_v53  ;;  %1051 = vperm.xlu0 %1425, %v2207_v53   ;;  %v1175_v28 = vld [vmem:[#allocation3 + $0x18] sm:$0xff]  ;;  %v602_v53 = vmul.f32 %v2216_v2, %v590_v21 }
 0x2fb   :  { %v1062_v2 = vld [vmem:[#allocation3 + $0x38] sm:$0xff] }
 0x2fc   :  { %v1042_v18 = vmul.f32 1.442695, %v1039_v37 }
 0x30a   :  { %v1434_v56 = vpop.permute.xlu0 %1433 }
 0x30b   :  { %v1435_v5 = vunpack.i.l.bf16 %v1434_v56  ;;  %v1436_v58 = vunpack.i.h.bf16 %v1434_v56 }
 0x30d   :  { %v791_v29 = vpop.permute.xlu1 %790  ;;  %842 = vmatpush.msra.mxu2 %v1435_v5  ;;  %v591_v5 = vld [vmem:[#allocation4 + $0x8] sm:$0xff] }
 0x30e   :  { %v794_v52 = vsub.f32 %v2048_v43, %v791_v29  ;;  %v786_v33 = vpop.permute.xlu2 %785 }
 0x30f   :  { %v793_v54 = vsub.f32 %v2097_v8, %v786_v33  ;;  %843 = vmatpush.msra.mxu2 %v1436_v58 }
 0x310   :  { %v797_v35 = vmul.f32 1.442695, %v794_v52  ;;  %v603_v52 = vmul.f32 %v2214_v47, %v591_v5 }
 0x311   :  { %v795_v61 = vmul.f32 1.442695, %v793_v54 }
 0x312   :  { %1458 = vpow2.f32 %v797_v35 }
 0x313   :  { %1460 = vpow2.f32 %v795_v61 }
 0x315   :  { %v1439_v44 = vpop.permute.xlu1 %1438 }
 0x316   :  { %v1440_v12 = vunpack.i.l.bf16 %v1439_v44  ;;  %v1441_v4 = vunpack.i.h.bf16 %v1439_v44 }
 0x318   :  { %v1459_v34 = vpop.eup %1458  ;;  %1103 = vmatpush.msra.mxu3 %v1440_v12 }
 0x319   :  { %v1461_v42 = vpop.eup %1460  ;;  %v807_v0 = vsel %vm258_vm3, %v1459_v34, 0.0 }
 0x31a   :  { %808 = vadd.xlane.f32.xlu1 %v807_v0  ;;  %1300 = vmatmul.msk.f32.vlgmr.msra.gmra.mxu2 %vm258_vm3, %v1461_v42  ;;  %v804_v43 = vsel %vm258_vm3, %v1461_v42, 0.0 }
 0x31b   :  { %v1047_v15 = vpop.permute.xlu2 %1046  ;;  %805 = vadd.xlane.f32.xlu2 %v804_v43  ;;  %1104 = vmatpush.msra.mxu3 %v1441_v4 }
 0x31c   :  { %v1054_v8 = vsub.f32 %v2110_v40, %v1047_v15  ;;  %v781_v40 = vmul.f32 1.442695, %v778_v59 }
 0x31e   :  { %v1056_v23 = vmul.f32 1.442695, %v1054_v8 }
 0x320   :  { %1462 = vpow2.f32 %v1056_v23 }
 0x321   :  { %1464 = vpow2.f32 %v779_v31 }
 0x322   :  { %1301 = vmatmul.msk.f32.gmra.mxu2 %vm258_vm3, %v1459_v34  ;;  %1466 = vpow2.f32 %v781_v40  ;;  %v1174_v34 = vld [vmem:[#allocation3 + $0x10] sm:$0xff] }
 0x323   :  { %1468 = vpow2.f32 %v1040_v49 }
 0x324   :  { %1470 = vrcp.f32 %v1143_v17 }
 0x326   :  { %v1463_v63 = vpop.eup %1462 }
 0x327   :  { %1302 = vmatmul.msk.f32.vlgmr.msra.gmra.mxu3 %vm258_vm3, %v1463_v63  ;;  %v1065_v14 = vsel %vm258_vm3, %v1463_v63, 0.0  ;;  %v1465_v9 = vpop.eup %1464 }
 0x328   :  { %1066 = vadd.xlane.f32.xlu0 %v1065_v14  ;;  %v1467_v32 = vpop.eup %1466  ;;  %v802_v13 = vmul.f32 %v1465_v9, %v800_v48 }
 0x329   :  { %v1469_v11 = vpop.eup %1468  ;;  %v803_v60 = vmul.f32 %v1467_v32, %v801_v27 }
 0x32a   :  { %v1471_v51 = vpop.eup %1470 }
 0x33c   :  { %855 = vperm.xlu0 %1425, %v1465_v9  }
 0x344   :  { %606 = vrot.lane.b32.xlu0 %v584_v16, %s1584_s11 }
 0x34c   :  { %608 = vrot.lane.b32.xlu0 %v587_v36, %s1584_s11 }
 0x354   :  { %860 = vperm.xlu0 %1425, %v1467_v32  }
 0x35c   :  { %1116 = vperm.xlu0 %1425, %v1469_v11  }
 0x364   :  { %1155 = vperm.xlu0 %1425, %v1471_v51  }
 0x36c   :  { %v1052_v10 = vpop.permute.xlu0 %1051 }
 0x36d   :  { %v1055_v38 = vsub.f32 %v2159_v6, %v1052_v10  ;;  %v1061_v6 = vld [vmem:[#allocation3 + $0x30] sm:$0xff] }
 0x36e   :  { %v1063_v30 = vmul.f32 %v1469_v11, %v1061_v6 }
 0x36f   :  { %v1058_v3 = vmul.f32 1.442695, %v1055_v38 }
 0x371   :  { %1472 = vpow2.f32 %v1058_v3 }
 0x377   :  { %v1473_v59 = vpop.eup %1472 }
 0x378   :  { %1303 = vmatmul.msk.f32.gmra.mxu3 %vm258_vm3, %v1473_v59  ;;  %v1068_v20 = vsel %vm258_vm3, %v1473_v59, 0.0 }
 0x379   :  { %1069 = vadd.xlane.f32.xlu2 %v1068_v20 }
 0x38d   :  { %v809_v22 = vpop.xlane.xlu1 %808 }
 0x38e   :  { %v811_v26 = vadd.f32 %v809_v22, %v803_v60  ;;  %v806_v25 = vpop.xlane.xlu2 %805 }
 0x38f   :  { %v810_v50 = vadd.f32 %v806_v25, %v802_v13 }
 0x390   :  { %813 = vst.msk [vmem:[#allocation3 + $0x28] sm:$0xff] %vm46_vm5, %v811_v26 }
 0x391   :  { %812 = vst.msk [vmem:[#allocation3 + $0x20] sm:$0xff] %vm46_vm5, %v810_v50 }
 0x397   :  { %v1207_v63 = vld [vmem:[#allocation3 + $0x28] sm:$0xff] }
 0x398   :  { %v1206_v24 = vld [vmem:[#allocation3 + $0x20] sm:$0xff] }
 0x399   :  { %1474 = vrcp.f32 %v1206_v24 }
 0x39a   :  { %1476 = vpow2.f32 %v1042_v18 }
 0x39b   :  { %v1067_v1 = vpop.xlane.xlu0 %1066  ;;  %1478 = vrcp.f32 %v1142_v7 }
 0x39c   :  { %v1071_v57 = vadd.f32 %v1067_v1, %v1063_v30  ;;  %1480 = vrcp.f32 %v1175_v28 }
 0x39d   :  { %v845_v19 = vpop.f32.mrf.mxu2 }
 0x39e   :  { %1073 = vst.msk [vmem:[#allocation3 + $0x30] sm:$0xff] %vm46_vm5, %v1071_v57  ;;  %867 = vrot.lane.b32.xlu1 %v845_v19, %s1585_s2 }
 0x39f   :  { %v1475_v62 = vpop.eup %1474 }
 0x3a0   :  { %1214 = vperm.xlu0 %1425, %v1475_v62   ;;  %v1477_v45 = vpop.eup %1476 }
 0x3a1   :  { %v1479_v41 = vpop.eup %1478  ;;  %v1064_v61 = vmul.f32 %v1477_v45, %v1062_v2 }
 0x3a2   :  { %v1481_v29 = vpop.eup %1480 }
 0x3a5   :  { %v848_v55 = vpop.f32.mrf.mxu2  ;;  %v1238_v58 = vld [vmem:[#allocation3 + $0x30] sm:$0xff] }
 0x3a6   :  { %1121 = vperm.xlu1 %1431, %v1477_v45   ;;  %869 = vrot.lane.b32.xlu2 %v848_v55, %s1585_s2  ;;  %1482 = vrcp.f32 %v1238_v58 }
 0x3aa   :  { %v1106_v46 = vpop.f32.mrf.mxu3 }
 0x3ac   :  { %v1483_v35 = vpop.eup %1482 }
 0x3ae   :  { %v856_v39 = vpop.permute.xlu0 %855  ;;  %1128 = vrot.lane.b32.xlu2 %v1106_v46, %s1586_s4 }
 0x3b6   :  { %v607_v37 = vpop.permute.xlu0 %606  ;;  %1150 = vperm.xlu2 %1430, %v1479_v41  }
 0x3b7   :  { %v612_v56 = vadd.f32 %v607_v37, %v602_v53 }
 0x3b9   :  { %615 = vst.msk [vmem:[#allocation4] sm:$0xff] %vm614_vm8, %v612_v56 }
 0x3be   :  { %v609_v33 = vpop.permute.xlu0 %608  ;;  %1187 = vperm.xlu2 %1430, %v1481_v29  }
 0x3bf   :  { %v613_v54 = vadd.f32 %v609_v33, %v603_v52 }
 0x3c0   :  { %v851_v9 = vld [vmem:[#allocation4] sm:$0xff] }
 0x3c1   :  { %616 = vst.msk [vmem:[#allocation4 + $0x8] sm:$0xff] %vm614_vm8, %v613_v54  ;;  %v863_v16 = vmul.f32 %v856_v39, %v851_v9 }
 0x3c6   :  { %1246 = vperm.xlu2 %1430, %v1483_v35   ;;  %v861_v43 = vpop.permute.xlu0 %860 }
 0x3c8   :  { %v852_v0 = vld [vmem:[#allocation4 + $0x8] sm:$0xff] }
 0x3c9   :  { %v864_v15 = vmul.f32 %v861_v43, %v852_v0 }
 0x3ce   :  { %v1117_v49 = vpop.permute.xlu0 %1116 }
 0x3d6   :  { %v1156_v13 = vpop.permute.xlu0 %1155 }
 0x3ec   :  { %v1070_v44 = vpop.xlane.xlu2 %1069 }
 0x3ed   :  { %v1072_v12 = vadd.f32 %v1070_v44, %v1064_v61 }
 0x3ef   :  { %1074 = vst.msk [vmem:[#allocation3 + $0x38] sm:$0xff] %vm46_vm5, %v1072_v12 }
 0x3f6   :  { %v1239_v4 = vld [vmem:[#allocation3 + $0x38] sm:$0xff] }
 0x3f7   :  { %1484 = vrcp.f32 %v1239_v4 }
 0x3f8   :  { %1486 = vrcp.f32 %v1174_v34 }
 0x3f9   :  { %1488 = vrcp.f32 %v1207_v63 }
 0x3fb   :  { %v1109_v42 = vpop.f32.mrf.mxu3 }
 0x3fc   :  { %1130 = vrot.lane.b32.xlu1 %v1109_v42, %s1586_s4 }
 0x3fd   :  { %v1485_v47 = vpop.eup %1484 }
 0x3fe   :  { %1251 = vperm.xlu0 %1425, %v1485_v47   ;;  %v1487_v14 = vpop.eup %1486 }
 0x3ff   :  { %v1489_v31 = vpop.eup %1488 }
 0x400   :  { %v870_v8 = vpop.permute.xlu2 %869 }
 0x401   :  { %v874_v23 = vadd.f32 %v870_v8, %v864_v15 }
 0x403   :  { %877 = vst.msk [vmem:[#allocation4 + $0x8] sm:$0xff] %vm875_vm9, %v874_v23 }
 0x404   :  { %1182 = vperm.xlu1 %1431, %v1487_v14  }
 0x408   :  { %v1129_v11 = vpop.permute.xlu2 %1128 }
 0x40a   :  { %v1113_v25 = vld [vmem:[#allocation4 + $0x8] sm:$0xff] }
 0x40c   :  { %1219 = vperm.xlu1 %1431, %v1489_v31  }
 0x410   :  { %v868_v40 = vpop.permute.xlu1 %867  ;;  %v1151_v38 = vpop.permute.xlu2 %1150 }
 0x411   :  { %v873_v36 = vadd.f32 %v868_v40, %v863_v16 }
 0x412   :  { %v1215_v50 = vpop.permute.xlu0 %1214 }
 0x413   :  { %876 = vst.msk [vmem:[#allocation4] sm:$0xff] %vm875_vm9, %v873_v36 }
 0x418   :  { %v1188_v22 = vpop.permute.xlu2 %1187  ;;  %v1122_v26 = vpop.permute.xlu1 %1121 }
 0x419   :  { %v1125_v6 = vmul.f32 %v1122_v26, %v1113_v25 }
 0x41a   :  { %v1112_v32 = vld [vmem:[#allocation4] sm:$0xff] }
 0x41b   :  { %v1124_v17 = vmul.f32 %v1117_v49, %v1112_v32 }
 0x41d   :  { %v1134_v51 = vadd.f32 %v1129_v11, %v1124_v17 }
 0x41f   :  { %1137 = vst.msk [vmem:[#allocation4] sm:$0xff] %vm1136_vm10, %v1134_v51 }
 0x420   :  { %v1247_v30 = vpop.permute.xlu2 %1246 }
 0x426   :  { %v1146_v10 = vld [vmem:[#allocation4] sm:$0xff] }
 0x427   :  { %v1158_v3 = vmul.f32 %v1151_v38, %v1146_v10  ;;  %v1222_v24 = vmul.f32 %v1215_v50, %v1146_v10  ;;  %v1254_v1 = vmul.f32 %v1247_v30, %v1146_v10 }
 0x429   :  { %v1162_v59 = vmin.f32 %v1158_v3, 0.0  ;;  %vm1160_vm11 = vcmp.gt.f32.partialorder %v1158_v3, 0.0  ;;  %v1226_v19 = vmin.f32 %v1222_v24, 0.0  ;;  %v1258_v62 = vmin.f32 %v1254_v1, 0.0 }
 0x42a   :  { %vm1224_vm13 = vcmp.gt.f32.partialorder %v1222_v24, 0.0  ;;  %vm1256_vm14 = vcmp.gt.f32.partialorder %v1254_v1, 0.0 }
 0x42b   :  { %v1164_v20 = vmul.f32 1.442695, %v1162_v59  ;;  %v1228_v45 = vmul.f32 1.442695, %v1226_v19  ;;  %v1260_v7 = vmul.f32 1.442695, %v1258_v62 }
 0x42d   :  { %1490 = vpow2.f32 %v1164_v20 }
 0x42e   :  { %1492 = vpow2.f32 %v1228_v45 }
 0x42f   :  { %1494 = vpow2.f32 %v1260_v7 }
 0x433   :  { %v1491_v27 = vpop.eup %1490 }
 0x434   :  { %v1304_v48 = vadd.f32 -1.0, %v1491_v27  ;;  %v1493_v61 = vpop.eup %1492 }
 0x435   :  { %v1495_v44 = vpop.eup %1494  ;;  %v1308_v34 = vadd.f32 -1.0, %v1493_v61 }
 0x436   :  { %v1170_v60 = vsel %vm1160_vm11, %v1158_v3, %v1304_v48  ;;  %v1310_v0 = vadd.f32 -1.0, %v1495_v44 }
 0x437   :  { %1172 = vst.msk [vmem:[#allocation8] sm:$0xff] %vm351_vm7, %v1170_v60  ;;  %v1234_v23 = vsel %vm1224_vm13, %v1222_v24, %v1308_v34 }
 0x438   :  { %v1266_v31 = vsel %vm1256_vm14, %v1254_v1, %v1310_v0 }
 0x46e   :  { %v1131_v18 = vpop.permute.xlu1 %1130 }
 0x46f   :  { %v1135_v57 = vadd.f32 %v1131_v18, %v1125_v6 }
 0x470   :  { %v1252_v39 = vpop.permute.xlu0 %1251 }
 0x471   :  { %1138 = vst.msk [vmem:[#allocation4 + $0x8] sm:$0xff] %vm1136_vm10, %v1135_v57 }
 0x476   :  { %v1183_v55 = vpop.permute.xlu1 %1182 }
 0x477   :  { %v1190_v46 = vmul.f32 %v1183_v55, %v1146_v10 }
 0x478   :  { %v1243_v21 = vld [vmem:[#allocation4 + $0x8] sm:$0xff] }
 0x479   :  { %v1255_v28 = vmul.f32 %v1252_v39, %v1243_v21  ;;  %v1194_v41 = vmin.f32 %v1190_v46, 0.0  ;;  %v1159_v53 = vmul.f32 %v1243_v21, %v1156_v13  ;;  %v1191_v37 = vmul.f32 %v1243_v21, %v1188_v22 }
 0x47a   :  { %vm1192_vm12 = vcmp.gt.f32.partialorder %v1190_v46, 0.0 }
 0x47b   :  { %v1259_v56 = vmin.f32 %v1255_v28, 0.0  ;;  %v1196_v5 = vmul.f32 1.442695, %v1194_v41  ;;  %v1163_v58 = vmin.f32 %v1159_v53, 0.0  ;;  %v1195_v29 = vmin.f32 %v1191_v37, 0.0 }
 0x47c   :  { %vm1161_vm15 = vcmp.gt.f32.partialorder %v1159_v53, 0.0  ;;  %vm1193_vm0 = vcmp.gt.f32.partialorder %v1191_v37, 0.0  ;;  %vm1257_vm2 = vcmp.gt.f32.partialorder %v1255_v28, 0.0 }
 0x47d   :  { %1496 = vpow2.f32 %v1196_v5  ;;  %v1262_v52 = vmul.f32 1.442695, %v1259_v56  ;;  %v1166_v54 = vmul.f32 1.442695, %v1163_v58  ;;  %v1198_v35 = vmul.f32 1.442695, %v1195_v29 }
 0x47e   :  { %v1220_v33 = vpop.permute.xlu1 %1219 }
 0x47f   :  { %v1223_v2 = vmul.f32 %v1243_v21, %v1220_v33  ;;  %1498 = vpow2.f32 %v1166_v54 }
 0x480   :  { %1500 = vpow2.f32 %v1198_v35 }
 0x481   :  { %v1227_v12 = vmin.f32 %v1223_v2, 0.0  ;;  %1502 = vpow2.f32 %v1262_v52  ;;  %vm1225_vm1 = vcmp.gt.f32.partialorder %v1223_v2, 0.0 }
 0x483   :  { %v1497_v4 = vpop.eup %1496  ;;  %v1230_v42 = vmul.f32 1.442695, %v1227_v12 }
 0x484   :  { %v1306_v47 = vadd.f32 -1.0, %v1497_v4 }
 0x485   :  { %1504 = vpow2.f32 %v1230_v42  ;;  %v1499_v43 = vpop.eup %1498 }
 0x486   :  { %v1202_v15 = vsel %vm1192_vm12, %v1190_v46, %v1306_v47  ;;  %v1501_v8 = vpop.eup %1500  ;;  %v1305_v63 = vadd.f32 -1.0, %v1499_v43 }
 0x487   :  { %1204 = vst.msk [vmem:[#allocation8] sm:$0xff] %vm614_vm8, %v1202_v15  ;;  %v1503_v14 = vpop.eup %1502  ;;  %v1307_v9 = vadd.f32 -1.0, %v1501_v8 }
 0x488   :  { %1236 = vst.msk [vmem:[#allocation8] sm:$0xff] %vm875_vm9, %v1234_v23  ;;  %v1171_v16 = vsel %vm1161_vm15, %v1159_v53, %v1305_v63  ;;  %v1311_v49 = vadd.f32 -1.0, %v1503_v14 }
 0x489   :  { %1268 = vst.msk [vmem:[#allocation8] sm:$0xff] %vm1136_vm10, %v1266_v31  ;;  %v1203_v40 = vsel %vm1193_vm0, %v1191_v37, %v1307_v9 }
 0x48a   :  { %1173 = vst.msk [vmem:[#allocation8 + $0x8] sm:$0xff] %vm351_vm7, %v1171_v16  ;;  %v1267_v11 = vsel %vm1257_vm2, %v1255_v28, %v1311_v49 }
 0x48b   :  { %v1505_v36 = vpop.eup %1504  ;;  %1205 = vst.msk [vmem:[#allocation8 + $0x8] sm:$0xff] %vm614_vm8, %v1203_v40 }
 0x48c   :  { %v1309_v32 = vadd.f32 -1.0, %v1505_v36 }
 0x48e   :  { %v1235_v17 = vsel %vm1225_vm1, %v1223_v2, %v1309_v32 }
 0x48f   :  { %1237 = vst.msk [vmem:[#allocation8 + $0x8] sm:$0xff] %vm875_vm9, %v1235_v17 }
 0x490   :  { %1269 = vst.msk [vmem:[#allocation8 + $0x8] sm:$0xff] %vm1136_vm10, %v1267_v11 }
 0x491   :  { %1282 = dma.vmem_to_hbm [thread:$0]  %s1275_s16, 256, %s1277_s14, [#allocation6], %s1588_s17, %s1588_s17, %s1584_s11  }
 0x492   :  { %1544 = dma.done.wait [#allocation6], 256  }
 0x493   :  { %1545 = vsyncadd [#allocation6], 4294967040 }
 0x494   :  { %1287 = vsyncpa [#allocation6], 1 }
 0x495   :  { %1288 = vsyncpa [#allocation7], 1 }

</bundles_post_ra>
